<compile_context>
chip_gen: v5e
topology: v5e:2x2
jax: 0.10.0
libtpu: 0.0.40
codegen_flags: <defaults>
</compile_context>

<pallas_src>
import math

import numpy as np

import jax
import jax.numpy as jnp
from jax.experimental import pallas as pl
from jax.experimental.pallas import tpu as pltpu

# ---------------------------------------------------------------------------
# network config: (name, params) exactly like the PyTorch Learner config list
# conv2d params: [ch_out, ch_in, kh, kw, stride, padding]
# ---------------------------------------------------------------------------
CONFIG = [
    ("conv2d", [8, 1, 3, 3, 2, 0]),
    ("relu", [True]),
    ("bn", [8]),
    ("conv2d", [8, 8, 3, 3, 2, 0]),
    ("relu", [True]),
    ("bn", [8]),
    ("conv2d", [8, 8, 3, 3, 2, 0]),
    ("relu", [True]),
    ("bn", [8]),
    ("flatten", []),
    ("linear", [5, 8 * 2 * 2]),
]

BN_EPS = 1e-5

# TODO(synk): convt2d / max_pool2d / avg_pool2d / upsample / tanh / sigmoid /
# leakyrelu / reshape branches of Learner are not needed by CONFIG and are not
# implemented in the fused-kernel builder below.


def _conv_out(size, k, s, p):
    return (size + 2 * p - k) // s + 1


# ---------------------------------------------------------------------------
# static plan: shapes + constant 0/1 selection matrices (numpy, shape-only)
# ---------------------------------------------------------------------------
def build_plan(config, in_shape):
    N, C, H, W = in_shape
    blocks = []
    i = 0
    while i < len(config) and config[i][0] == "conv2d":
        cout, cin, kh, kw, stride, pad = config[i][1][:6]
        if cin != C:
            raise ValueError("channel mismatch in config")
        if kh != kw or pad != 0:
            # TODO(synk): padded / non-square convs would need zero-padded
            # selection matrices; not needed by CONFIG.
            raise NotImplementedError("only square kernels with padding=0")
        OH = _conv_out(H, kh, stride, pad)
        OW = _conv_out(W, kw, stride, pad)

        post = []
        j = i + 1
        while j < len(config) and config[j][0] in ("relu", "bn"):
            post.append(config[j][0])
            j += 1

        # height selection matrices: (Hsel_d @ A)[n*OH+oh, :] = A[n*H + s*oh + d, :]
        hsel = []
        for d in range(kh):
            m = np.zeros((N * OH, N * H), np.float32)
            for n in range(N):
                for oh in range(OH):
                    m[n * OH + oh, n * H + stride * oh + d] = 1.0
            hsel.append(m)

        # width-selection mask, folded with the conv weight in the wrapper:
        # wmask[iw, ow, dj] = 1 iff iw == stride*ow + dj
        wmask = np.zeros((W, OW, kw), np.float32)
        for ow in range(OW):
            for d in range(kw):
                wmask[stride * ow + d, ow, d] = 1.0

        # per-channel reduction over the [OW*C] lane axis for batch-norm
        kmat = np.tile(np.eye(cout, dtype=np.float32), (OW, 1))   # [OW*C, C]

        blocks.append(dict(
            cin=cin, cout=cout, k=kh, stride=stride,
            IH=H, IW=W, OH=OH, OW=OW, post=tuple(post),
            hsel=hsel, wmask=wmask, kmat=kmat,
        ))
        C, H, W = cout, OH, OW
        i = j

    if not (i + 2 == len(config)
            and config[i][0] == "flatten" and config[i + 1][0] == "linear"):
        raise NotImplementedError("expected conv blocks followed by flatten+linear")
    out_f, in_f = config[i + 1][1]
    assert in_f == C * H * W, (in_f, C, H, W)

    # row selection for the flatten->linear stage: picks the rows with a given oh
    rsel = []
    for oh in range(H):
        m = np.zeros((N, N * H), np.float32)
        for n in range(N):
            m[n, n * H + oh] = 1.0
        rsel.append(m)

    tail = dict(C=C, OH=H, OW=W, out_f=out_f, rsel=rsel)
    return dict(N=N, blocks=blocks, tail=tail)


# ---------------------------------------------------------------------------
# fused Pallas kernel: the whole network in one launch
# ---------------------------------------------------------------------------
def make_fused_kernel(plan):
    blocks, tail, N = plan["blocks"], plan["tail"], plan["N"]

    def kernel(*refs):
        out_ref = refs[-1]
        in_refs = refs[:-1]
        cursor = [0]

        def nxt():
            r = in_refs[cursor[0]]
            cursor[0] += 1
            return r

        a = nxt()[...]                                   # [N*H0, W0*C0]

        for blk in blocks:
            k = blk["k"]
            hs = [nxt()[...] for _ in range(k)]          # [N*OH, N*IH]
            es = [nxt()[...] for _ in range(k)]          # [IW*Cin, OW*Cout]
            bias_l = nxt()[...]                          # [1, OW*Cout]

            # conv:  y = bias + sum_d  Hsel_d @ a @ E_d     (all MXU matmuls)
            y = bias_l
            for d in range(k):
                t = jnp.dot(hs[d], a, preferred_element_type=jnp.float32)
                y = y + jnp.dot(t, es[d], preferred_element_type=jnp.float32)

            for op in blk["post"]:
                if op == "relu":
                    y = jnp.maximum(y, 0.0)
                elif op == "bn":
                    gamma_c = nxt()[...]                 # [1, C]
                    beta_l = nxt()[...]                  # [1, OW*C]
                    kmat = nxt()[...]                    # [OW*C, C]
                    kmat_t = nxt()[...]                  # [C, OW*C]
                    cnt = float(N * blk["OH"] * blk["OW"])
                    row_sum = jnp.sum(y, axis=0, keepdims=True)          # [1, OW*C]
                    mean_c = jnp.dot(row_sum, kmat,
                                     preferred_element_type=jnp.float32) / cnt
                    mean_l = jnp.dot(mean_c, kmat_t,
                                     preferred_element_type=jnp.float32)
                    yc = y - mean_l
                    var_c = jnp.dot(jnp.sum(yc * yc, axis=0, keepdims=True), kmat,
                                    preferred_element_type=jnp.float32) / cnt
                    scale_c = gamma_c * jax.lax.rsqrt(var_c + BN_EPS)
                    scale_l = jnp.dot(scale_c, kmat_t,
                                      preferred_element_type=jnp.float32)
                    y = yc * scale_l + beta_l
            a = y

        # flatten (PyTorch NCHW order, baked into the permuted linear weights)
        # + linear
        logits = None
        for _ in range(tail["OH"]):
            rsel = nxt()[...]                            # [N, N*OH]
            wl = nxt()[...]                              # [OW*C, out_f]
            t = jnp.dot(jnp.dot(rsel, a, preferred_element_type=jnp.float32), wl,
                        preferred_element_type=jnp.float32)
            logits = t if logits is None else logits + t
        logits = logits + nxt()[...]                     # [1, out_f] bias
        out_ref[...] = logits

    return kernel


# ---------------------------------------------------------------------------
# wrapper: builds the (tiny) kernel inputs from the PyTorch-layout params and
# issues a single pallas_call
# ---------------------------------------------------------------------------
def make_forward(config, in_shape):
    plan = build_plan(config, in_shape)
    kernel = make_fused_kernel(plan)
    N = plan["N"]
    out_f = plan["tail"]["out_f"]

    def forward(x, vars_list):
        blocks, tail = plan["blocks"], plan["tail"]
        inputs = []

        # channels-last, lane-dense input slab [N*H, W*Cin]
        Nb, C0, H0, W0 = x.shape
        inputs.append(jnp.transpose(x, (0, 2, 3, 1)).reshape(Nb * H0, W0 * C0))

        idx = 0
        for blk in blocks:
            w, b = vars_list[idx], vars_list[idx + 1]
            idx += 2
            for d in range(blk["k"]):
                inputs.append(jnp.asarray(blk["hsel"][d]))
            for d in range(blk["k"]):
                # fold width selection + conv weight:
                # E_d[(iw,cin),(ow,cout)] = W[cout, cin, d, iw - s*ow] (if valid)
                e4 = jnp.einsum("xoj,kcj->xcok", jnp.asarray(blk["wmask"]),
                                w[:, :, d, :],
                                precision=jax.lax.Precision.HIGHEST)
                inputs.append(e4.reshape(blk["IW"] * blk["cin"],
                                         blk["OW"] * blk["cout"]))
            inputs.append(jnp.tile(b, blk["OW"]).reshape(1, blk["OW"] * blk["cout"]))
            for op in blk["post"]:
                if op == "bn":
                    g, bb = vars_list[idx], vars_list[idx + 1]
                    idx += 2
                    inputs.append(g.reshape(1, blk["cout"]))
                    inputs.append(jnp.tile(bb, blk["OW"]).reshape(
                        1, blk["OW"] * blk["cout"]))
                    inputs.append(jnp.asarray(blk["kmat"]))
                    inputs.append(jnp.asarray(np.ascontiguousarray(blk["kmat"].T)))

        # linear: permute columns so lane-order (ow, c) matches NCHW flatten
        w_lin, b_lin = vars_list[idx], vars_list[idx + 1]
        idx += 2
        C, OH, OW = tail["C"], tail["OH"], tail["OW"]
        w4 = w_lin.reshape(tail["out_f"], C, OH, OW)
        for oh in range(OH):
            inputs.append(jnp.asarray(tail["rsel"][oh]))
            wl = jnp.transpose(w4[:, :, oh, :], (2, 1, 0)).reshape(
                OW * C, tail["out_f"])
            inputs.append(wl)
        inputs.append(b_lin.reshape(1, tail["out_f"]))
        assert idx == len(vars_list)

        vmem = pl.BlockSpec(memory_space=pltpu.MemorySpace.VMEM)
        return pl.pallas_call(
            kernel,
            out_shape=jax.ShapeDtypeStruct((N, out_f), jnp.float32),
            in_specs=[vmem] * len(inputs),
            out_specs=vmem,
        )(*inputs)

    return jax.jit(forward)


# ---------------------------------------------------------------------------
# parameter init (same ordering as Learner.vars); biases / BN affine params
# get small random values so the correctness check exercises those paths
# ---------------------------------------------------------------------------
def init_params(config, key):
    vars_list = []
    for name, param in config:
        if name == "conv2d":
            cout, cin, kh, kw = param[:4]
            key, k1, k2 = jax.random.split(key, 3)
            w = jax.random.normal(k1, (cout, cin, kh, kw), jnp.float32) * math.sqrt(
                2.0 / (cin * kh * kw))
            b = 0.1 * jax.random.normal(k2, (cout,), jnp.float32)
            vars_list += [w, b]
        elif name == "linear":
            out_f, in_f = param
            key, k1, k2 = jax.random.split(key, 3)
            w = jax.random.normal(k1, (out_f, in_f), jnp.float32) * math.sqrt(
                2.0 / in_f)
            b = 0.1 * jax.random.normal(k2, (out_f,), jnp.float32)
            vars_list += [w, b]
        elif name == "bn":
            c = param[0]
            key, k1, k2 = jax.random.split(key, 3)
            g = 1.0 + 0.1 * jax.random.normal(k1, (c,), jnp.float32)
            bb = 0.1 * jax.random.normal(k2, (c,), jnp.float32)
            vars_list += [g, bb]
        # relu / flatten carry no parameters
    return vars_list


# ---------------------------------------------------------------------------
# pure-JAX reference (correctness check only)
# ---------------------------------------------------------------------------
def reference_forward(x, vars_list, config):
    idx = 0
    for name, param in config:
        if name == "conv2d":
            w, b = vars_list[idx], vars_list[idx + 1]
            stride, pad = param[4], param[5]
            x = jax.lax.conv_general_dilated(
                x, w, (stride, stride), [(pad, pad), (pad, pad)],
                dimension_numbers=("NCHW", "OIHW", "NCHW"),
            ) + b.reshape(1, -1, 1, 1)
            idx += 2
        elif name == "linear":
            w, b = vars_list[idx], vars_list[idx + 1]
            x = x @ w.T + b
            idx += 2
        elif name == "bn":
            g, b = vars_list[idx], vars_list[idx + 1]
            axes = (0, 2, 3) if x.ndim == 4 else (0,)
            mean = jnp.mean(x, axis=axes, keepdims=True)
            var = jnp.mean((x - mean) ** 2, axis=axes, keepdims=True)
            gs = g.reshape(1, -1, 1, 1) if x.ndim == 4 else g
            bs = b.reshape(1, -1, 1, 1) if x.ndim == 4 else b
            x = (x - mean) * jax.lax.rsqrt(var + BN_EPS) * gs + bs
            idx += 2
        elif name == "relu":
            x = jnp.maximum(x, 0.0)
        elif name == "flatten":
            x = x.reshape(x.shape[0], -1)
    return x


if __name__ == "__main__":
    key = jax.random.PRNGKey(0)
    key, pkey, xkey = jax.random.split(key, 3)

    params = init_params(CONFIG, pkey)
    x = jax.random.normal(xkey, (2, 1, 28, 28), jnp.float32)   # [b, 1, 28, 28]

    forward = make_forward(CONFIG, (2, 1, 28, 28))
    out = jax.block_until_ready(forward(x, params))

    ref = jax.block_until_ready(reference_forward(x, params, CONFIG))
    assert out.shape == (2, 5), out.shape
    assert jnp.allclose(out, ref, rtol=2e-3, atol=2e-3), "mismatch vs reference"

    print("KERNEL_OK")
</pallas_src>

<mosaic_0001>
module attributes {stable_mosaic.version = 11 : i64} {
  func.func @kernel(%arg0: memref<56x28xf32, #tpu.memory_space<vmem>>, %arg1: memref<26x56xf32, #tpu.memory_space<vmem>>, %arg2: memref<26x56xf32, #tpu.memory_space<vmem>>, %arg3: memref<26x56xf32, #tpu.memory_space<vmem>>, %arg4: memref<28x104xf32, #tpu.memory_space<vmem>>, %arg5: memref<28x104xf32, #tpu.memory_space<vmem>>, %arg6: memref<28x104xf32, #tpu.memory_space<vmem>>, %arg7: memref<1x104xf32, #tpu.memory_space<vmem>>, %arg8: memref<1x8xf32, #tpu.memory_space<vmem>>, %arg9: memref<1x104xf32, #tpu.memory_space<vmem>>, %arg10: memref<104x8xf32, #tpu.memory_space<vmem>>, %arg11: memref<8x104xf32, #tpu.memory_space<vmem>>, %arg12: memref<12x26xf32, #tpu.memory_space<vmem>>, %arg13: memref<12x26xf32, #tpu.memory_space<vmem>>, %arg14: memref<12x26xf32, #tpu.memory_space<vmem>>, %arg15: memref<104x48xf32, #tpu.memory_space<vmem>>, %arg16: memref<104x48xf32, #tpu.memory_space<vmem>>, %arg17: memref<104x48xf32, #tpu.memory_space<vmem>>, %arg18: memref<1x48xf32, #tpu.memory_space<vmem>>, %arg19: memref<1x8xf32, #tpu.memory_space<vmem>>, %arg20: memref<1x48xf32, #tpu.memory_space<vmem>>, %arg21: memref<48x8xf32, #tpu.memory_space<vmem>>, %arg22: memref<8x48xf32, #tpu.memory_space<vmem>>, %arg23: memref<4x12xf32, #tpu.memory_space<vmem>>, %arg24: memref<4x12xf32, #tpu.memory_space<vmem>>, %arg25: memref<4x12xf32, #tpu.memory_space<vmem>>, %arg26: memref<48x16xf32, #tpu.memory_space<vmem>>, %arg27: memref<48x16xf32, #tpu.memory_space<vmem>>, %arg28: memref<48x16xf32, #tpu.memory_space<vmem>>, %arg29: memref<1x16xf32, #tpu.memory_space<vmem>>, %arg30: memref<1x8xf32, #tpu.memory_space<vmem>>, %arg31: memref<1x16xf32, #tpu.memory_space<vmem>>, %arg32: memref<16x8xf32, #tpu.memory_space<vmem>>, %arg33: memref<8x16xf32, #tpu.memory_space<vmem>>, %arg34: memref<2x4xf32, #tpu.memory_space<vmem>>, %arg35: memref<16x5xf32, #tpu.memory_space<vmem>>, %arg36: memref<2x4xf32, #tpu.memory_space<vmem>>, %arg37: memref<16x5xf32, #tpu.memory_space<vmem>>, %arg38: memref<1x5xf32, #tpu.memory_space<vmem>>, %arg39: memref<2x5xf32, #tpu.memory_space<vmem>>) attributes {dimension_semantics = [], scalar_prefetch = 0 : i64, scratch_operands = 0 : i64, tpu.core_type = #tpu.core_type<tc>} {
    %c0 = arith.constant 0 : index
    %c0_0 = arith.constant 0 : index
    %0 = vector.load %arg0[%c0, %c0_0] : memref<56x28xf32, #tpu.memory_space<vmem>>, vector<56x28xf32>
    %c0_1 = arith.constant 0 : index
    %c0_2 = arith.constant 0 : index
    %1 = vector.load %arg1[%c0_1, %c0_2] : memref<26x56xf32, #tpu.memory_space<vmem>>, vector<26x56xf32>
    %c0_3 = arith.constant 0 : index
    %c0_4 = arith.constant 0 : index
    %2 = vector.load %arg2[%c0_3, %c0_4] : memref<26x56xf32, #tpu.memory_space<vmem>>, vector<26x56xf32>
    %c0_5 = arith.constant 0 : index
    %c0_6 = arith.constant 0 : index
    %3 = vector.load %arg3[%c0_5, %c0_6] : memref<26x56xf32, #tpu.memory_space<vmem>>, vector<26x56xf32>
    %c0_7 = arith.constant 0 : index
    %c0_8 = arith.constant 0 : index
    %4 = vector.load %arg4[%c0_7, %c0_8] : memref<28x104xf32, #tpu.memory_space<vmem>>, vector<28x104xf32>
    %c0_9 = arith.constant 0 : index
    %c0_10 = arith.constant 0 : index
    %5 = vector.load %arg5[%c0_9, %c0_10] : memref<28x104xf32, #tpu.memory_space<vmem>>, vector<28x104xf32>
    %c0_11 = arith.constant 0 : index
    %c0_12 = arith.constant 0 : index
    %6 = vector.load %arg6[%c0_11, %c0_12] : memref<28x104xf32, #tpu.memory_space<vmem>>, vector<28x104xf32>
    %c0_13 = arith.constant 0 : index
    %c0_14 = arith.constant 0 : index
    %7 = vector.load %arg7[%c0_13, %c0_14] : memref<1x104xf32, #tpu.memory_space<vmem>>, vector<1x104xf32>
    %cst = arith.constant dense<0.000000e+00> : vector<26x28xf32>
    %8 = tpu.matmul %1, %0, %cst {dimension_numbers = #tpu.dot_dimension_numbers<[1], [0], [0], [1], [0, 0, 1, 1], [], []>} : vector<26x56xf32>, vector<56x28xf32>, vector<26x28xf32> -> vector<26x28xf32>
    %cst_15 = arith.constant dense<0.000000e+00> : vector<26x104xf32>
    %9 = tpu.matmul %8, %4, %cst_15 {dimension_numbers = #tpu.dot_dimension_numbers<[1], [0], [0], [1], [0, 0, 1, 1], [], []>} : vector<26x28xf32>, vector<28x104xf32>, vector<26x104xf32> -> vector<26x104xf32>
    %10 = vector.broadcast %7 : vector<1x104xf32> to vector<26x104xf32>
    %11 = arith.addf %10, %9 : vector<26x104xf32>
    %cst_16 = arith.constant dense<0.000000e+00> : vector<26x28xf32>
    %12 = tpu.matmul %2, %0, %cst_16 {dimension_numbers = #tpu.dot_dimension_numbers<[1], [0], [0], [1], [0, 0, 1, 1], [], []>} : vector<26x56xf32>, vector<56x28xf32>, vector<26x28xf32> -> vector<26x28xf32>
    %cst_17 = arith.constant dense<0.000000e+00> : vector<26x104xf32>
    %13 = tpu.matmul %12, %5, %cst_17 {dimension_numbers = #tpu.dot_dimension_numbers<[1], [0], [0], [1], [0, 0, 1, 1], [], []>} : vector<26x28xf32>, vector<28x104xf32>, vector<26x104xf32> -> vector<26x104xf32>
    %14 = arith.addf %11, %13 : vector<26x104xf32>
    %cst_18 = arith.constant dense<0.000000e+00> : vector<26x28xf32>
    %15 = tpu.matmul %3, %0, %cst_18 {dimension_numbers = #tpu.dot_dimension_numbers<[1], [0], [0], [1], [0, 0, 1, 1], [], []>} : vector<26x56xf32>, vector<56x28xf32>, vector<26x28xf32> -> vector<26x28xf32>
    %cst_19 = arith.constant dense<0.000000e+00> : vector<26x104xf32>
    %16 = tpu.matmul %15, %6, %cst_19 {dimension_numbers = #tpu.dot_dimension_numbers<[1], [0], [0], [1], [0, 0, 1, 1], [], []>} : vector<26x28xf32>, vector<28x104xf32>, vector<26x104xf32> -> vector<26x104xf32>
    %17 = arith.addf %14, %16 : vector<26x104xf32>
    %cst_20 = arith.constant 0.000000e+00 : f32
    %18 = vector.broadcast %cst_20 : f32 to vector<26x104xf32>
    %19 = arith.maximumf %17, %18 : vector<26x104xf32>
    %c0_21 = arith.constant 0 : index
    %c0_22 = arith.constant 0 : index
    %20 = vector.load %arg8[%c0_21, %c0_22] : memref<1x8xf32, #tpu.memory_space<vmem>>, vector<1x8xf32>
    %c0_23 = arith.constant 0 : index
    %c0_24 = arith.constant 0 : index
    %21 = vector.load %arg9[%c0_23, %c0_24] : memref<1x104xf32, #tpu.memory_space<vmem>>, vector<1x104xf32>
    %c0_25 = arith.constant 0 : index
    %c0_26 = arith.constant 0 : index
    %22 = vector.load %arg10[%c0_25, %c0_26] : memref<104x8xf32, #tpu.memory_space<vmem>>, vector<104x8xf32>
    %c0_27 = arith.constant 0 : index
    %c0_28 = arith.constant 0 : index
    %23 = vector.load %arg11[%c0_27, %c0_28] : memref<8x104xf32, #tpu.memory_space<vmem>>, vector<8x104xf32>
    %cst_29 = arith.constant dense<0.000000e+00> : vector<104xf32>
    %24 = vector.multi_reduction <add>, %19, %cst_29 [0] : vector<26x104xf32> to vector<104xf32>
    %25 = vector.shape_cast %24 : vector<104xf32> to vector<1x104xf32>
    %cst_30 = arith.constant dense<0.000000e+00> : vector<1x8xf32>
    %26 = tpu.matmul %25, %22, %cst_30 {dimension_numbers = #tpu.dot_dimension_numbers<[1], [0], [0], [1], [0, 0, 1, 1], [], []>} : vector<1x104xf32>, vector<104x8xf32>, vector<1x8xf32> -> vector<1x8xf32>
    %cst_31 = arith.constant 3.380000e+02 : f32
    %27 = vector.broadcast %cst_31 : f32 to vector<1x8xf32>
    %28 = arith.divf %26, %27 : vector<1x8xf32>
    %cst_32 = arith.constant dense<0.000000e+00> : vector<1x104xf32>
    %29 = tpu.matmul %28, %23, %cst_32 {dimension_numbers = #tpu.dot_dimension_numbers<[1], [0], [0], [1], [0, 0, 1, 1], [], []>} : vector<1x8xf32>, vector<8x104xf32>, vector<1x104xf32> -> vector<1x104xf32>
    %30 = vector.broadcast %29 : vector<1x104xf32> to vector<26x104xf32>
    %31 = arith.subf %19, %30 : vector<26x104xf32>
    %32 = arith.mulf %31, %31 : vector<26x104xf32>
    %cst_33 = arith.constant dense<0.000000e+00> : vector<104xf32>
    %33 = vector.multi_reduction <add>, %32, %cst_33 [0] : vector<26x104xf32> to vector<104xf32>
    %34 = vector.shape_cast %33 : vector<104xf32> to vector<1x104xf32>
    %cst_34 = arith.constant dense<0.000000e+00> : vector<1x8xf32>
    %35 = tpu.matmul %34, %22, %cst_34 {dimension_numbers = #tpu.dot_dimension_numbers<[1], [0], [0], [1], [0, 0, 1, 1], [], []>} : vector<1x104xf32>, vector<104x8xf32>, vector<1x8xf32> -> vector<1x8xf32>
    %cst_35 = arith.constant 3.380000e+02 : f32
    %36 = vector.broadcast %cst_35 : f32 to vector<1x8xf32>
    %37 = arith.divf %35, %36 : vector<1x8xf32>
    %cst_36 = arith.constant 9.99999974E-6 : f32
    %38 = vector.broadcast %cst_36 : f32 to vector<1x8xf32>
    %39 = arith.addf %37, %38 : vector<1x8xf32>
    %40 = math.rsqrt %39 : vector<1x8xf32>
    %41 = arith.mulf %20, %40 : vector<1x8xf32>
    %cst_37 = arith.constant dense<0.000000e+00> : vector<1x104xf32>
    %42 = tpu.matmul %41, %23, %cst_37 {dimension_numbers = #tpu.dot_dimension_numbers<[1], [0], [0], [1], [0, 0, 1, 1], [], []>} : vector<1x8xf32>, vector<8x104xf32>, vector<1x104xf32> -> vector<1x104xf32>
    %43 = vector.broadcast %42 : vector<1x104xf32> to vector<26x104xf32>
    %44 = arith.mulf %31, %43 : vector<26x104xf32>
    %45 = vector.broadcast %21 : vector<1x104xf32> to vector<26x104xf32>
    %46 = arith.addf %44, %45 : vector<26x104xf32>
    %c0_38 = arith.constant 0 : index
    %c0_39 = arith.constant 0 : index
    %47 = vector.load %arg12[%c0_38, %c0_39] : memref<12x26xf32, #tpu.memory_space<vmem>>, vector<12x26xf32>
    %c0_40 = arith.constant 0 : index
    %c0_41 = arith.constant 0 : index
    %48 = vector.load %arg13[%c0_40, %c0_41] : memref<12x26xf32, #tpu.memory_space<vmem>>, vector<12x26xf32>
    %c0_42 = arith.constant 0 : index
    %c0_43 = arith.constant 0 : index
    %49 = vector.load %arg14[%c0_42, %c0_43] : memref<12x26xf32, #tpu.memory_space<vmem>>, vector<12x26xf32>
    %c0_44 = arith.constant 0 : index
    %c0_45 = arith.constant 0 : index
    %50 = vector.load %arg15[%c0_44, %c0_45] : memref<104x48xf32, #tpu.memory_space<vmem>>, vector<104x48xf32>
    %c0_46 = arith.constant 0 : index
    %c0_47 = arith.constant 0 : index
    %51 = vector.load %arg16[%c0_46, %c0_47] : memref<104x48xf32, #tpu.memory_space<vmem>>, vector<104x48xf32>
    %c0_48 = arith.constant 0 : index
    %c0_49 = arith.constant 0 : index
    %52 = vector.load %arg17[%c0_48, %c0_49] : memref<104x48xf32, #tpu.memory_space<vmem>>, vector<104x48xf32>
    %c0_50 = arith.constant 0 : index
    %c0_51 = arith.constant 0 : index
    %53 = vector.load %arg18[%c0_50, %c0_51] : memref<1x48xf32, #tpu.memory_space<vmem>>, vector<1x48xf32>
    %cst_52 = arith.constant dense<0.000000e+00> : vector<12x104xf32>
    %54 = tpu.matmul %47, %46, %cst_52 {dimension_numbers = #tpu.dot_dimension_numbers<[1], [0], [0], [1], [0, 0, 1, 1], [], []>} : vector<12x26xf32>, vector<26x104xf32>, vector<12x104xf32> -> vector<12x104xf32>
    %cst_53 = arith.constant dense<0.000000e+00> : vector<12x48xf32>
    %55 = tpu.matmul %54, %50, %cst_53 {dimension_numbers = #tpu.dot_dimension_numbers<[1], [0], [0], [1], [0, 0, 1, 1], [], []>} : vector<12x104xf32>, vector<104x48xf32>, vector<12x48xf32> -> vector<12x48xf32>
    %56 = vector.broadcast %53 : vector<1x48xf32> to vector<12x48xf32>
    %57 = arith.addf %56, %55 : vector<12x48xf32>
    %cst_54 = arith.constant dense<0.000000e+00> : vector<12x104xf32>
    %58 = tpu.matmul %48, %46, %cst_54 {dimension_numbers = #tpu.dot_dimension_numbers<[1], [0], [0], [1], [0, 0, 1, 1], [], []>} : vector<12x26xf32>, vector<26x104xf32>, vector<12x104xf32> -> vector<12x104xf32>
    %cst_55 = arith.constant dense<0.000000e+00> : vector<12x48xf32>
    %59 = tpu.matmul %58, %51, %cst_55 {dimension_numbers = #tpu.dot_dimension_numbers<[1], [0], [0], [1], [0, 0, 1, 1], [], []>} : vector<12x104xf32>, vector<104x48xf32>, vector<12x48xf32> -> vector<12x48xf32>
    %60 = arith.addf %57, %59 : vector<12x48xf32>
    %cst_56 = arith.constant dense<0.000000e+00> : vector<12x104xf32>
    %61 = tpu.matmul %49, %46, %cst_56 {dimension_numbers = #tpu.dot_dimension_numbers<[1], [0], [0], [1], [0, 0, 1, 1], [], []>} : vector<12x26xf32>, vector<26x104xf32>, vector<12x104xf32> -> vector<12x104xf32>
    %cst_57 = arith.constant dense<0.000000e+00> : vector<12x48xf32>
    %62 = tpu.matmul %61, %52, %cst_57 {dimension_numbers = #tpu.dot_dimension_numbers<[1], [0], [0], [1], [0, 0, 1, 1], [], []>} : vector<12x104xf32>, vector<104x48xf32>, vector<12x48xf32> -> vector<12x48xf32>
    %63 = arith.addf %60, %62 : vector<12x48xf32>
    %cst_58 = arith.constant 0.000000e+00 : f32
    %64 = vector.broadcast %cst_58 : f32 to vector<12x48xf32>
    %65 = arith.maximumf %63, %64 : vector<12x48xf32>
    %c0_59 = arith.constant 0 : index
    %c0_60 = arith.constant 0 : index
    %66 = vector.load %arg19[%c0_59, %c0_60] : memref<1x8xf32, #tpu.memory_space<vmem>>, vector<1x8xf32>
    %c0_61 = arith.constant 0 : index
    %c0_62 = arith.constant 0 : index
    %67 = vector.load %arg20[%c0_61, %c0_62] : memref<1x48xf32, #tpu.memory_space<vmem>>, vector<1x48xf32>
    %c0_63 = arith.constant 0 : index
    %c0_64 = arith.constant 0 : index
    %68 = vector.load %arg21[%c0_63, %c0_64] : memref<48x8xf32, #tpu.memory_space<vmem>>, vector<48x8xf32>
    %c0_65 = arith.constant 0 : index
    %c0_66 = arith.constant 0 : index
    %69 = vector.load %arg22[%c0_65, %c0_66] : memref<8x48xf32, #tpu.memory_space<vmem>>, vector<8x48xf32>
    %cst_67 = arith.constant dense<0.000000e+00> : vector<48xf32>
    %70 = vector.multi_reduction <add>, %65, %cst_67 [0] : vector<12x48xf32> to vector<48xf32>
    %71 = vector.shape_cast %70 : vector<48xf32> to vector<1x48xf32>
    %cst_68 = arith.constant dense<0.000000e+00> : vector<1x8xf32>
    %72 = tpu.matmul %71, %68, %cst_68 {dimension_numbers = #tpu.dot_dimension_numbers<[1], [0], [0], [1], [0, 0, 1, 1], [], []>} : vector<1x48xf32>, vector<48x8xf32>, vector<1x8xf32> -> vector<1x8xf32>
    %cst_69 = arith.constant 7.200000e+01 : f32
    %73 = vector.broadcast %cst_69 : f32 to vector<1x8xf32>
    %74 = arith.divf %72, %73 : vector<1x8xf32>
    %cst_70 = arith.constant dense<0.000000e+00> : vector<1x48xf32>
    %75 = tpu.matmul %74, %69, %cst_70 {dimension_numbers = #tpu.dot_dimension_numbers<[1], [0], [0], [1], [0, 0, 1, 1], [], []>} : vector<1x8xf32>, vector<8x48xf32>, vector<1x48xf32> -> vector<1x48xf32>
    %76 = vector.broadcast %75 : vector<1x48xf32> to vector<12x48xf32>
    %77 = arith.subf %65, %76 : vector<12x48xf32>
    %78 = arith.mulf %77, %77 : vector<12x48xf32>
    %cst_71 = arith.constant dense<0.000000e+00> : vector<48xf32>
    %79 = vector.multi_reduction <add>, %78, %cst_71 [0] : vector<12x48xf32> to vector<48xf32>
    %80 = vector.shape_cast %79 : vector<48xf32> to vector<1x48xf32>
    %cst_72 = arith.constant dense<0.000000e+00> : vector<1x8xf32>
    %81 = tpu.matmul %80, %68, %cst_72 {dimension_numbers = #tpu.dot_dimension_numbers<[1], [0], [0], [1], [0, 0, 1, 1], [], []>} : vector<1x48xf32>, vector<48x8xf32>, vector<1x8xf32> -> vector<1x8xf32>
    %cst_73 = arith.constant 7.200000e+01 : f32
    %82 = vector.broadcast %cst_73 : f32 to vector<1x8xf32>
    %83 = arith.divf %81, %82 : vector<1x8xf32>
    %cst_74 = arith.constant 9.99999974E-6 : f32
    %84 = vector.broadcast %cst_74 : f32 to vector<1x8xf32>
    %85 = arith.addf %83, %84 : vector<1x8xf32>
    %86 = math.rsqrt %85 : vector<1x8xf32>
    %87 = arith.mulf %66, %86 : vector<1x8xf32>
    %cst_75 = arith.constant dense<0.000000e+00> : vector<1x48xf32>
    %88 = tpu.matmul %87, %69, %cst_75 {dimension_numbers = #tpu.dot_dimension_numbers<[1], [0], [0], [1], [0, 0, 1, 1], [], []>} : vector<1x8xf32>, vector<8x48xf32>, vector<1x48xf32> -> vector<1x48xf32>
    %89 = vector.broadcast %88 : vector<1x48xf32> to vector<12x48xf32>
    %90 = arith.mulf %77, %89 : vector<12x48xf32>
    %91 = vector.broadcast %67 : vector<1x48xf32> to vector<12x48xf32>
    %92 = arith.addf %90, %91 : vector<12x48xf32>
    %c0_76 = arith.constant 0 : index
    %c0_77 = arith.constant 0 : index
    %93 = vector.load %arg23[%c0_76, %c0_77] : memref<4x12xf32, #tpu.memory_space<vmem>>, vector<4x12xf32>
    %c0_78 = arith.constant 0 : index
    %c0_79 = arith.constant 0 : index
    %94 = vector.load %arg24[%c0_78, %c0_79] : memref<4x12xf32, #tpu.memory_space<vmem>>, vector<4x12xf32>
    %c0_80 = arith.constant 0 : index
    %c0_81 = arith.constant 0 : index
    %95 = vector.load %arg25[%c0_80, %c0_81] : memref<4x12xf32, #tpu.memory_space<vmem>>, vector<4x12xf32>
    %c0_82 = arith.constant 0 : index
    %c0_83 = arith.constant 0 : index
    %96 = vector.load %arg26[%c0_82, %c0_83] : memref<48x16xf32, #tpu.memory_space<vmem>>, vector<48x16xf32>
    %c0_84 = arith.constant 0 : index
    %c0_85 = arith.constant 0 : index
    %97 = vector.load %arg27[%c0_84, %c0_85] : memref<48x16xf32, #tpu.memory_space<vmem>>, vector<48x16xf32>
    %c0_86 = arith.constant 0 : index
    %c0_87 = arith.constant 0 : index
    %98 = vector.load %arg28[%c0_86, %c0_87] : memref<48x16xf32, #tpu.memory_space<vmem>>, vector<48x16xf32>
    %c0_88 = arith.constant 0 : index
    %c0_89 = arith.constant 0 : index
    %99 = vector.load %arg29[%c0_88, %c0_89] : memref<1x16xf32, #tpu.memory_space<vmem>>, vector<1x16xf32>
    %cst_90 = arith.constant dense<0.000000e+00> : vector<4x48xf32>
    %100 = tpu.matmul %93, %92, %cst_90 {dimension_numbers = #tpu.dot_dimension_numbers<[1], [0], [0], [1], [0, 0, 1, 1], [], []>} : vector<4x12xf32>, vector<12x48xf32>, vector<4x48xf32> -> vector<4x48xf32>
    %cst_91 = arith.constant dense<0.000000e+00> : vector<4x16xf32>
    %101 = tpu.matmul %100, %96, %cst_91 {dimension_numbers = #tpu.dot_dimension_numbers<[1], [0], [0], [1], [0, 0, 1, 1], [], []>} : vector<4x48xf32>, vector<48x16xf32>, vector<4x16xf32> -> vector<4x16xf32>
    %102 = vector.broadcast %99 : vector<1x16xf32> to vector<4x16xf32>
    %103 = arith.addf %102, %101 : vector<4x16xf32>
    %cst_92 = arith.constant dense<0.000000e+00> : vector<4x48xf32>
    %104 = tpu.matmul %94, %92, %cst_92 {dimension_numbers = #tpu.dot_dimension_numbers<[1], [0], [0], [1], [0, 0, 1, 1], [], []>} : vector<4x12xf32>, vector<12x48xf32>, vector<4x48xf32> -> vector<4x48xf32>
    %cst_93 = arith.constant dense<0.000000e+00> : vector<4x16xf32>
    %105 = tpu.matmul %104, %97, %cst_93 {dimension_numbers = #tpu.dot_dimension_numbers<[1], [0], [0], [1], [0, 0, 1, 1], [], []>} : vector<4x48xf32>, vector<48x16xf32>, vector<4x16xf32> -> vector<4x16xf32>
    %106 = arith.addf %103, %105 : vector<4x16xf32>
    %cst_94 = arith.constant dense<0.000000e+00> : vector<4x48xf32>
    %107 = tpu.matmul %95, %92, %cst_94 {dimension_numbers = #tpu.dot_dimension_numbers<[1], [0], [0], [1], [0, 0, 1, 1], [], []>} : vector<4x12xf32>, vector<12x48xf32>, vector<4x48xf32> -> vector<4x48xf32>
    %cst_95 = arith.constant dense<0.000000e+00> : vector<4x16xf32>
    %108 = tpu.matmul %107, %98, %cst_95 {dimension_numbers = #tpu.dot_dimension_numbers<[1], [0], [0], [1], [0, 0, 1, 1], [], []>} : vector<4x48xf32>, vector<48x16xf32>, vector<4x16xf32> -> vector<4x16xf32>
    %109 = arith.addf %106, %108 : vector<4x16xf32>
    %cst_96 = arith.constant 0.000000e+00 : f32
    %110 = vector.broadcast %cst_96 : f32 to vector<4x16xf32>
    %111 = arith.maximumf %109, %110 : vector<4x16xf32>
    %c0_97 = arith.constant 0 : index
    %c0_98 = arith.constant 0 : index
    %112 = vector.load %arg30[%c0_97, %c0_98] : memref<1x8xf32, #tpu.memory_space<vmem>>, vector<1x8xf32>
    %c0_99 = arith.constant 0 : index
    %c0_100 = arith.constant 0 : index
    %113 = vector.load %arg31[%c0_99, %c0_100] : memref<1x16xf32, #tpu.memory_space<vmem>>, vector<1x16xf32>
    %c0_101 = arith.constant 0 : index
    %c0_102 = arith.constant 0 : index
    %114 = vector.load %arg32[%c0_101, %c0_102] : memref<16x8xf32, #tpu.memory_space<vmem>>, vector<16x8xf32>
    %c0_103 = arith.constant 0 : index
    %c0_104 = arith.constant 0 : index
    %115 = vector.load %arg33[%c0_103, %c0_104] : memref<8x16xf32, #tpu.memory_space<vmem>>, vector<8x16xf32>
    %cst_105 = arith.constant dense<0.000000e+00> : vector<16xf32>
    %116 = vector.multi_reduction <add>, %111, %cst_105 [0] : vector<4x16xf32> to vector<16xf32>
    %117 = vector.shape_cast %116 : vector<16xf32> to vector<1x16xf32>
    %cst_106 = arith.constant dense<0.000000e+00> : vector<1x8xf32>
    %118 = tpu.matmul %117, %114, %cst_106 {dimension_numbers = #tpu.dot_dimension_numbers<[1], [0], [0], [1], [0, 0, 1, 1], [], []>} : vector<1x16xf32>, vector<16x8xf32>, vector<1x8xf32> -> vector<1x8xf32>
    %cst_107 = arith.constant 8.000000e+00 : f32
    %119 = vector.broadcast %cst_107 : f32 to vector<1x8xf32>
    %120 = arith.divf %118, %119 : vector<1x8xf32>
    %cst_108 = arith.constant dense<0.000000e+00> : vector<1x16xf32>
    %121 = tpu.matmul %120, %115, %cst_108 {dimension_numbers = #tpu.dot_dimension_numbers<[1], [0], [0], [1], [0, 0, 1, 1], [], []>} : vector<1x8xf32>, vector<8x16xf32>, vector<1x16xf32> -> vector<1x16xf32>
    %122 = vector.broadcast %121 : vector<1x16xf32> to vector<4x16xf32>
    %123 = arith.subf %111, %122 : vector<4x16xf32>
    %124 = arith.mulf %123, %123 : vector<4x16xf32>
    %cst_109 = arith.constant dense<0.000000e+00> : vector<16xf32>
    %125 = vector.multi_reduction <add>, %124, %cst_109 [0] : vector<4x16xf32> to vector<16xf32>
    %126 = vector.shape_cast %125 : vector<16xf32> to vector<1x16xf32>
    %cst_110 = arith.constant dense<0.000000e+00> : vector<1x8xf32>
    %127 = tpu.matmul %126, %114, %cst_110 {dimension_numbers = #tpu.dot_dimension_numbers<[1], [0], [0], [1], [0, 0, 1, 1], [], []>} : vector<1x16xf32>, vector<16x8xf32>, vector<1x8xf32> -> vector<1x8xf32>
    %cst_111 = arith.constant 8.000000e+00 : f32
    %128 = vector.broadcast %cst_111 : f32 to vector<1x8xf32>
    %129 = arith.divf %127, %128 : vector<1x8xf32>
    %cst_112 = arith.constant 9.99999974E-6 : f32
    %130 = vector.broadcast %cst_112 : f32 to vector<1x8xf32>
    %131 = arith.addf %129, %130 : vector<1x8xf32>
    %132 = math.rsqrt %131 : vector<1x8xf32>
    %133 = arith.mulf %112, %132 : vector<1x8xf32>
    %cst_113 = arith.constant dense<0.000000e+00> : vector<1x16xf32>
    %134 = tpu.matmul %133, %115, %cst_113 {dimension_numbers = #tpu.dot_dimension_numbers<[1], [0], [0], [1], [0, 0, 1, 1], [], []>} : vector<1x8xf32>, vector<8x16xf32>, vector<1x16xf32> -> vector<1x16xf32>
    %135 = vector.broadcast %134 : vector<1x16xf32> to vector<4x16xf32>
    %136 = arith.mulf %123, %135 : vector<4x16xf32>
    %137 = vector.broadcast %113 : vector<1x16xf32> to vector<4x16xf32>
    %138 = arith.addf %136, %137 : vector<4x16xf32>
    %c0_114 = arith.constant 0 : index
    %c0_115 = arith.constant 0 : index
    %139 = vector.load %arg34[%c0_114, %c0_115] : memref<2x4xf32, #tpu.memory_space<vmem>>, vector<2x4xf32>
    %c0_116 = arith.constant 0 : index
    %c0_117 = arith.constant 0 : index
    %140 = vector.load %arg35[%c0_116, %c0_117] : memref<16x5xf32, #tpu.memory_space<vmem>>, vector<16x5xf32>
    %cst_118 = arith.constant dense<0.000000e+00> : vector<2x16xf32>
    %141 = tpu.matmul %139, %138, %cst_118 {dimension_numbers = #tpu.dot_dimension_numbers<[1], [0], [0], [1], [0, 0, 1, 1], [], []>} : vector<2x4xf32>, vector<4x16xf32>, vector<2x16xf32> -> vector<2x16xf32>
    %cst_119 = arith.constant dense<0.000000e+00> : vector<2x5xf32>
    %142 = tpu.matmul %141, %140, %cst_119 {dimension_numbers = #tpu.dot_dimension_numbers<[1], [0], [0], [1], [0, 0, 1, 1], [], []>} : vector<2x16xf32>, vector<16x5xf32>, vector<2x5xf32> -> vector<2x5xf32>
    %c0_120 = arith.constant 0 : index
    %c0_121 = arith.constant 0 : index
    %143 = vector.load %arg36[%c0_120, %c0_121] : memref<2x4xf32, #tpu.memory_space<vmem>>, vector<2x4xf32>
    %c0_122 = arith.constant 0 : index
    %c0_123 = arith.constant 0 : index
    %144 = vector.load %arg37[%c0_122, %c0_123] : memref<16x5xf32, #tpu.memory_space<vmem>>, vector<16x5xf32>
    %cst_124 = arith.constant dense<0.000000e+00> : vector<2x16xf32>
    %145 = tpu.matmul %143, %138, %cst_124 {dimension_numbers = #tpu.dot_dimension_numbers<[1], [0], [0], [1], [0, 0, 1, 1], [], []>} : vector<2x4xf32>, vector<4x16xf32>, vector<2x16xf32> -> vector<2x16xf32>
    %cst_125 = arith.constant dense<0.000000e+00> : vector<2x5xf32>
    %146 = tpu.matmul %145, %144, %cst_125 {dimension_numbers = #tpu.dot_dimension_numbers<[1], [0], [0], [1], [0, 0, 1, 1], [], []>} : vector<2x16xf32>, vector<16x5xf32>, vector<2x5xf32> -> vector<2x5xf32>
    %147 = arith.addf %142, %146 : vector<2x5xf32>
    %c0_126 = arith.constant 0 : index
    %c0_127 = arith.constant 0 : index
    %148 = vector.load %arg38[%c0_126, %c0_127] : memref<1x5xf32, #tpu.memory_space<vmem>>, vector<1x5xf32>
    %149 = vector.broadcast %148 : vector<1x5xf32> to vector<2x5xf32>
    %150 = arith.addf %147, %149 : vector<2x5xf32>
    %c0_128 = arith.constant 0 : index
    %c0_129 = arith.constant 0 : index
    %151 = vector.load %arg39[%c0_128, %c0_129] : memref<2x5xf32, #tpu.memory_space<vmem>>, vector<2x5xf32>
    tpu.vector_store %arg39[%c0_128, %c0_129], %150 {strides = array<i32>} : memref<2x5xf32, #tpu.memory_space<vmem>>, vector<2x5xf32>,
    return
  }
}

</mosaic_0001>

<bundles_post_ra>
// kernel: tile.34
= control target key start
LH: loop header
LB: loop body
LE: loop exit
PB: predicated region body
PF: predicated region fallthrough
CT: control target
= control target key end

     0   :  { %s107_s10 = smov 96   ;;  %s108_s11 = smov 80   ;;  %vm3_vm0 = vcmask 64512   ;;  %vm9_vm1 = vcmask 851712   ;;  %vm15_vm2 = vcmask 786112   ;;  %vm21_vm3 = vcmask 720512   ;;  %s171_s0 = inlined_call_operand.vmem [shape: f32[13,8], index: 0, kind: input, shape index: {}]   ;;  %s172_s1 = inlined_call_operand.vmem [shape: f32[1,104], index: 1, kind: output, shape index: {}]  }
   0x1   :  { %v83_v0 = vld [vmem:[%s171_s0 + $0xc] sm:$0x1]   ;;  %v85_v1 = vld [vmem:[%s171_s0 + $0xa] sm:$0x1]   ;;  %v87_v2 = vld [vmem:[%s171_s0 + $0x8] sm:$0x1]  }
   0x2   :  { %7 = vrot.lane.b32.xlu0 %v83_v0, %s107_s10  ;;  %19 = vrot.lane.b32.xlu1 %v85_v1, %s108_s11  ;;  %s109_s14 = smov 64   ;;  %v84_v3 = vld [vmem:[%s171_s0 + $0xb] sm:$0x1]   ;;  %v86_v4 = vld [vmem:[%s171_s0 + $0x9] sm:$0x1]   ;;  %s110_s19 = smov 88  }
   0x3   :  { %31 = vrot.lane.b32.xlu2 %v87_v2, %s109_s14  ;;  %s111_s20 = smov 72   ;;  %v88_v5 = vld [vmem:[%s171_s0 + $0x7] sm:$0x1]   ;;  %s112_s23 = smov 56   ;;  %v89_v6 = vld [vmem:[%s171_s0 + $0x6] sm:$0x1]  }
   0x4   :  { %v90_v7 = vld [vmem:[%s171_s0 + $0x5] sm:$0x1]   ;;  %s113_s28 = smov 48   ;;  %s114_s29 = smov 40   ;;  %v91_v8 = vld [vmem:[%s171_s0 + $0x4] sm:$0x1]  }
   0x5   :  { %s115_s3 = smov 32   ;;  %v92_v9 = vld [vmem:[%s171_s0 + $0x3] sm:$0x1]   ;;  %v93_v10 = vld [vmem:[%s171_s0 + $0x2] sm:$0x1]   ;;  %s116_s8 = smov 24  }
   0x6   :  { %s117_s9 = smov 16   ;;  %v94_v11 = vld [vmem:[%s171_s0 + $0x1] sm:$0x1]   ;;  %s118_s12 = smov 8   ;;  %v2_v12 = vld [vmem:[%s171_s0] sm:$0x1]  }
   0x7   :  { %4 = vst.msk [vmem:[#allocation0] sm:$0x1] %vm3_vm0, %v2_v12   ;;  %vm27_vm4 = vcmask 654912   ;;  %vm33_vm5 = vcmask 589312   ;;  %vm39_vm6 = vcmask 523712   ;;  %vm45_vm7 = vcmask 458112  }
   0x8   :  { %vm51_vm8 = vcmask 392512   ;;  %vm57_vm9 = vcmask 326912   ;;  %vm63_vm10 = vcmask 261312   ;;  %vm69_vm11 = vcmask 195712  }
   0x9   :  { %vm75_vm12 = vcmask 130112  }
   0xa   :  { %13 = vrot.lane.b32.xlu0 %v84_v3, %s110_s19  ;;  %25 = vrot.lane.b32.xlu1 %v86_v4, %s111_s20 }
   0xb   :  { %37 = vrot.lane.b32.xlu2 %v88_v5, %s112_s23 }
  0x12   :  { %43 = vrot.lane.b32.xlu0 %v89_v6, %s113_s28  ;;  %49 = vrot.lane.b32.xlu1 %v90_v7, %s114_s29 }
  0x13   :  { %55 = vrot.lane.b32.xlu2 %v91_v8, %s115_s3 }
  0x1a   :  { %61 = vrot.lane.b32.xlu0 %v92_v9, %s116_s8  ;;  %67 = vrot.lane.b32.xlu1 %v93_v10, %s117_s9 }
  0x1b   :  { %73 = vrot.lane.b32.xlu2 %v94_v11, %s118_s12 }
  0x5d   :  { %v32_v13 = vpop.permute.xlu2 %31  }
  0x65   :  { %v38_v14 = vpop.permute.xlu2 %37  }
  0x6d   :  { %v56_v15 = vpop.permute.xlu2 %55  }
  0x74   :  { %v8_v16 = vpop.permute.xlu0 %7   ;;  %v20_v17 = vpop.permute.xlu1 %19  }
  0x75   :  { %10 = vst.msk [vmem:[#allocation0] sm:$0x1] %vm9_vm1, %v8_v16   ;;  %v74_v18 = vpop.permute.xlu2 %73  }
  0x7c   :  { %v14_v19 = vpop.permute.xlu0 %13   ;;  %v26_v20 = vpop.permute.xlu1 %25  }
  0x7d   :  { %16 = vst.msk [vmem:[#allocation0] sm:$0x1] %vm15_vm2, %v14_v19  }
  0x7e   :  { %22 = vst.msk [vmem:[#allocation0] sm:$0x1] %vm21_vm3, %v20_v17  }
  0x7f   :  { %28 = vst.msk [vmem:[#allocation0] sm:$0x1] %vm27_vm4, %v26_v20  }
  0x80   :  { %34 = vst.msk [vmem:[#allocation0] sm:$0x1] %vm33_vm5, %v32_v13  }
  0x81   :  { %40 = vst.msk [vmem:[#allocation0] sm:$0x1] %vm39_vm6, %v38_v14  }
  0x84   :  { %v44_v21 = vpop.permute.xlu0 %43   ;;  %v50_v22 = vpop.permute.xlu1 %49  }
  0x85   :  { %46 = vst.msk [vmem:[#allocation0] sm:$0x1] %vm45_vm7, %v44_v21  }
  0x86   :  { %52 = vst.msk [vmem:[#allocation0] sm:$0x1] %vm51_vm8, %v50_v22  }
  0x87   :  { %58 = vst.msk [vmem:[#allocation0] sm:$0x1] %vm57_vm9, %v56_v15  }
  0x8c   :  { %v62_v23 = vpop.permute.xlu0 %61   ;;  %v68_v24 = vpop.permute.xlu1 %67  }
  0x8d   :  { %64 = vst.msk [vmem:[#allocation0] sm:$0x1] %vm63_vm10, %v62_v23  }
  0x8e   :  { %70 = vst.msk [vmem:[#allocation0] sm:$0x1] %vm69_vm11, %v68_v24  }
  0x8f   :  { %76 = vst.msk [vmem:[#allocation0] sm:$0x1] %vm75_vm12, %v74_v18  }
  0x96   :  { %v79_v25 = vld [vmem:[#allocation0] sm:$0x1] }
  0x97   :  { %82 = vst [vmem:[%s172_s1] sm:$0x1] %v79_v25 }

// kernel: tile.43
= control target key start
LH: loop header
LB: loop body
LE: loop exit
PB: predicated region body
PF: predicated region fallthrough
CT: control target
= control target key end

     0   :  { %s22_s0 = inlined_call_operand.vmem [shape: f32[8], index: 0, kind: input, shape index: {}]   ;;  %s23_s1 = inlined_call_operand.vmem [shape: f32[6,8], index: 1, kind: output, shape index: {}]  }
   0x1   :  { %v4_v0 = vld [vmem:[%s22_s0] ss:$0 sm:$0xff] }
   0x2   :  { %5 = vst [vmem:[%s23_s1] sm:$0xff] %v4_v0 }

// kernel: tile.33
= control target key start
LH: loop header
LB: loop body
LE: loop exit
PB: predicated region body
PF: predicated region fallthrough
CT: control target
= control target key end

     0   :  { %s28_s0 = inlined_call_operand.vmem [shape: f32[8], index: 0, kind: input, shape index: {}]   ;;  %s29_s1 = inlined_call_operand.vmem [shape: f32[13,8], index: 1, kind: output, shape index: {}]  }
   0x1   :  { %v4_v0 = vld [vmem:[%s28_s0] ss:$0 sm:$0xff] }
   0x2   :  { %5 = vst [vmem:[%s29_s1] sm:$0xff] %v4_v0 }
   0x3   :  { %8 = vst [vmem:[%s29_s1 + $0x8] sm:$0xff] %v4_v0 }

// kernel: tile.44
= control target key start
LH: loop header
LB: loop body
LE: loop exit
PB: predicated region body
PF: predicated region fallthrough
CT: control target
= control target key end

     0   :  { %s51_s10 = smov 40   ;;  %s52_s11 = smov 24   ;;  %vm3_vm0 = vcmask 64512   ;;  %vm9_vm1 = vcmask 392512   ;;  %vm15_vm2 = vcmask 326912   ;;  %vm21_vm3 = vcmask 261312   ;;  %s87_s0 = inlined_call_operand.vmem [shape: f32[6,8], index: 0, kind: input, shape index: {}]   ;;  %s88_s1 = inlined_call_operand.vmem [shape: f32[1,48], index: 1, kind: output, shape index: {}]  }
   0x1   :  { %v41_v0 = vld [vmem:[%s87_s0 + $0x5] sm:$0x1]   ;;  %v43_v1 = vld [vmem:[%s87_s0 + $0x3] sm:$0x1]   ;;  %v45_v2 = vld [vmem:[%s87_s0 + $0x1] sm:$0x1]  }
   0x2   :  { %7 = vrot.lane.b32.xlu0 %v41_v0, %s51_s10  ;;  %19 = vrot.lane.b32.xlu1 %v43_v1, %s52_s11  ;;  %s53_s14 = smov 8   ;;  %v42_v3 = vld [vmem:[%s87_s0 + $0x4] sm:$0x1]   ;;  %v44_v4 = vld [vmem:[%s87_s0 + $0x2] sm:$0x1]   ;;  %s54_s19 = smov 32  }
   0x3   :  { %31 = vrot.lane.b32.xlu2 %v45_v2, %s53_s14  ;;  %s55_s20 = smov 16   ;;  %v2_v5 = vld [vmem:[%s87_s0] sm:$0x1]   ;;  %vm27_vm4 = vcmask 195712   ;;  %vm33_vm5 = vcmask 130112  }
   0x4   :  { %4 = vst.msk [vmem:[#allocation0] sm:$0x1] %vm3_vm0, %v2_v5  }
   0xa   :  { %13 = vrot.lane.b32.xlu0 %v42_v3, %s54_s19  ;;  %25 = vrot.lane.b32.xlu1 %v44_v4, %s55_s20 }
  0x5d   :  { %v32_v6 = vpop.permute.xlu2 %31  }
  0x74   :  { %v8_v7 = vpop.permute.xlu0 %7   ;;  %v20_v8 = vpop.permute.xlu1 %19  }
  0x75   :  { %10 = vst.msk [vmem:[#allocation0] sm:$0x1] %vm9_vm1, %v8_v7  }
  0x7c   :  { %v14_v9 = vpop.permute.xlu0 %13   ;;  %v26_v10 = vpop.permute.xlu1 %25  }
  0x7d   :  { %16 = vst.msk [vmem:[#allocation0] sm:$0x1] %vm15_vm2, %v14_v9  }
  0x7e   :  { %22 = vst.msk [vmem:[#allocation0] sm:$0x1] %vm21_vm3, %v20_v8  }
  0x7f   :  { %28 = vst.msk [vmem:[#allocation0] sm:$0x1] %vm27_vm4, %v26_v10  }
  0x80   :  { %34 = vst.msk [vmem:[#allocation0] sm:$0x1] %vm33_vm5, %v32_v6  }
  0x87   :  { %v37_v11 = vld [vmem:[#allocation0] sm:$0x1] }
  0x88   :  { %40 = vst [vmem:[%s88_s1] sm:$0x1] %v37_v11 }

// kernel: tile.53
= control target key start
LH: loop header
LB: loop body
LE: loop exit
PB: predicated region body
PF: predicated region fallthrough
CT: control target
= control target key end

     0   :  { %s22_s0 = inlined_call_operand.vmem [shape: f32[8], index: 0, kind: input, shape index: {}]   ;;  %s23_s1 = inlined_call_operand.vmem [shape: f32[2,8], index: 1, kind: output, shape index: {}]  }
   0x1   :  { %v4_v0 = vld [vmem:[%s22_s0] ss:$0 sm:$0xff] }
   0x2   :  { %5 = vst [vmem:[%s23_s1] sm:$0x3] %v4_v0 }

// kernel: tile.54
= control target key start
LH: loop header
LB: loop body
LE: loop exit
PB: predicated region body
PF: predicated region fallthrough
CT: control target
= control target key end

     0   :  { %vm7_vm0 = vcmask 64512   ;;  %vm13_vm1 = vcmask 130112   ;;  %s39_s0 = inlined_call_operand.vmem [shape: f32[2,8], index: 0, kind: input, shape index: {}]   ;;  %s40_s1 = inlined_call_operand.vmem [shape: f32[1,16], index: 1, kind: output, shape index: {}]  }
   0x1   :  { %v4_v0 = vld [vmem:[%s39_s0] sm:$0x3]  ;;  %s22_s0 = smov 8  }
   0x2   :  { %5 = vst [vmem:[#allocation1] sm:$0x3] %v4_v0 }
   0x9   :  { %v10_v1 = vld [vmem:[#allocation1 + $0x1] sm:$0x1]   ;;  %v6_v2 = vld [vmem:[#allocation1] sm:$0x1]  }
   0xa   :  { %11 = vrot.lane.b32.xlu0 %v10_v1, %s22_s0  ;;  %8 = vst.msk [vmem:[#allocation0] sm:$0x1] %vm7_vm0, %v6_v2  }
  0x7c   :  { %v12_v3 = vpop.permute.xlu0 %11  }
  0x7d   :  { %14 = vst.msk [vmem:[#allocation0] sm:$0x1] %vm13_vm1, %v12_v3  }
  0x84   :  { %v17_v4 = vld [vmem:[#allocation0] sm:$0x1] }
  0x85   :  { %20 = vst [vmem:[%s40_s1] sm:$0x1] %v17_v4 }

// kernel: forward.1
= control target key start
LH: loop header
LB: loop body
LE: loop exit
PB: predicated region body
PF: predicated region fallthrough
CT: control target
= control target key end

     0   :  { %s1677_s6 = smov 1   ;;  %s1678_s10 = smov 2   ;;  %s2145_s0 = inlined_call_operand.smem [shape: u32[40], index: -1, kind: input, shape index: {}] }
   0x1   :  { %s1728_s5 = sld [smem:[%s2145_s0]]   ;;  %s1679_s14 = smov 3  }
   0x2   :  { %s1733_s9 = sld [smem:[%s2145_s0 + %s1677_s6]]   ;;  %s1680_s18 = smov 4  }
   0x3   :  { %s1738_s13 = sld [smem:[%s2145_s0 + %s1678_s10]]   ;;  %s1681_s22 = smov 5  }
   0x4   :  { %s1743_s17 = sld [smem:[%s2145_s0 + %s1679_s14]]   ;;  %s1682_s26 = smov 6  }
   0x5   :  { %s1748_s21 = sld [smem:[%s2145_s0 + %s1680_s18]]   ;;  %s1683_s30 = smov 7  }
   0x6   :  { %s1753_s25 = sld [smem:[%s2145_s0 + %s1681_s22]]   ;;  %s1684_s4 = smov 8  }
   0x7   :  { %s1758_s29 = sld [smem:[%s2145_s0 + %s1682_s26]]   ;;  %s1685_s10 = smov 9  }
   0x8   :  { %s1763_s3 = sld [smem:[%s2145_s0 + %s1683_s30]]   ;;  %s1686_s15 = smov 10  }
   0x9   :  { %s1768_s8 = sld [smem:[%s2145_s0 + %s1684_s4]]   ;;  %s1687_s20 = smov 11  }
   0xa   :  { %s1773_s14 = sld [smem:[%s2145_s0 + %s1685_s10]]   ;;  %s1688_s26 = smov 12  }
   0xb   :  { %s1778_s19 = sld [smem:[%s2145_s0 + %s1686_s15]]   ;;  %s1689_s1 = smov 13  }
   0xc   :  { %s1783_s24 = sld [smem:[%s2145_s0 + %s1687_s20]]   ;;  %s1690_s7 = smov 14  }
   0xd   :  { %s1788_s30 = sld [smem:[%s2145_s0 + %s1688_s26]]   ;;  %s1691_s15 = smov 15  }
   0xe   :  { %s1793_s6 = sld [smem:[%s2145_s0 + %s1689_s1]]   ;;  %s1692_s22 = smov 16  }
   0xf   :  { %s1798_s12 = sld [smem:[%s2145_s0 + %s1690_s7]]   ;;  %s1693_s28 = smov 17  }
  0x10   :  { %s1803_s20 = sld [smem:[%s2145_s0 + %s1691_s15]]   ;;  %s1694_s7 = smov 18  }
  0x11   :  { %s1808_s27 = sld [smem:[%s2145_s0 + %s1692_s22]]   ;;  %s1695_s15 = smov 19  }
  0x12   :  { %s1813_s4 = sld [smem:[%s2145_s0 + %s1693_s28]]   ;;  %s1696_s22 = smov 20  }
  0x13   :  { %s1697_s28 = smov 21  }
  0x14   :  { %2156 = sst [smem:[#allocation5_spill]] %s1793_s6 }
  0x15   :  { %2157 = sst [smem:[#allocation6_spill]] %s1798_s12 }
  0x16   :  { %s1818_s12 = sld [smem:[%s2145_s0 + %s1694_s7]]   ;;  %s1698_s7 = smov 22  }
  0x17   :  { %2158 = sst [smem:[#allocation7_spill]] %s1808_s27 }
  0x18   :  { %2159 = sst [smem:[#allocation8_spill]] %s1813_s4 }
  0x19   :  { %s1823_s6 = sld [smem:[%s2145_s0 + %s1695_s15]]   ;;  %s1699_s15 = smov 23  }
  0x1a   :  { %s1828_s27 = sld [smem:[%s2145_s0 + %s1696_s22]]   ;;  %s1700_s22 = smov 24  }
  0x1b   :  { %s1833_s4 = sld [smem:[%s2145_s0 + %s1697_s28]]   ;;  %s1701_s28 = smov 25  }
  0x1c   :  { %2160 = sst [smem:[#allocation9_spill]] %s1818_s12 }
  0x1d   :  { %s1838_s12 = sld [smem:[%s2145_s0 + %s1698_s7]]   ;;  %s1702_s7 = smov 26  }
  0x1f   :  { %2161 = sst [smem:[#allocation10_spill]] %s1823_s6 }
  0x20   :  { %2162 = sst [smem:[#allocation11_spill]] %s1828_s27 }
  0x21   :  { %2163 = sst [smem:[#allocation12_spill]] %s1833_s4 }
  0x22   :  { %s1843_s6 = sld [smem:[%s2145_s0 + %s1699_s15]]   ;;  %s1703_s15 = smov 27  }
  0x23   :  { %2164 = sst [smem:[#allocation13_spill]] %s1838_s12 }
  0x24   :  { %s1848_s27 = sld [smem:[%s2145_s0 + %s1700_s22]]   ;;  %s1704_s22 = smov 28  }
  0x25   :  { %s1853_s4 = sld [smem:[%s2145_s0 + %s1701_s28]]   ;;  %s1705_s28 = smov 29  }
  0x26   :  { %s1858_s12 = sld [smem:[%s2145_s0 + %s1702_s7]]   ;;  %s1706_s7 = smov 30  }
  0x28   :  { %2165 = sst [smem:[#allocation14_spill]] %s1843_s6 }
  0x29   :  { %s1863_s6 = sld [smem:[%s2145_s0 + %s1703_s15]]   ;;  %s1707_s15 = smov 31  }
  0x2a   :  { %2166 = sst [smem:[#allocation15_spill]] %s1848_s27 }
  0x2b   :  { %2167 = sst [smem:[#allocation16_spill]] %s1853_s4 }
  0x2c   :  { %2168 = sst [smem:[#allocation17_spill]] %s1858_s12 }
  0x2d   :  { %s1868_s27 = sld [smem:[%s2145_s0 + %s1704_s22]]   ;;  %s1708_s22 = smov 32  }
  0x2e   :  { %s1873_s4 = sld [smem:[%s2145_s0 + %s1705_s28]]   ;;  %s1709_s28 = smov 33  }
  0x2f   :  { %2169 = sst [smem:[#allocation18_spill]] %s1863_s6 }
  0x30   :  { %s1878_s12 = sld [smem:[%s2145_s0 + %s1706_s7]]   ;;  %s1710_s7 = smov 34  }
  0x31   :  { %s1883_s6 = sld [smem:[%s2145_s0 + %s1707_s15]]   ;;  %s1711_s15 = smov 35  }
  0x33   :  { %2170 = sst [smem:[#allocation19_spill]] %s1868_s27 }
  0x34   :  { %2171 = sst [smem:[#allocation20_spill]] %s1873_s4 }
  0x35   :  { %s1888_s27 = sld [smem:[%s2145_s0 + %s1708_s22]]   ;;  %s1712_s22 = smov 36  }
  0x36   :  { %2172 = sst [smem:[#allocation21_spill]] %s1878_s12 }
  0x37   :  { %2173 = sst [smem:[#allocation22_spill]] %s1883_s6 }
  0x38   :  { %s1893_s4 = sld [smem:[%s2145_s0 + %s1709_s28]]   ;;  %s1713_s28 = smov 37  }
  0x39   :  { %s1898_s12 = sld [smem:[%s2145_s0 + %s1710_s7]]   ;;  %s1714_s7 = smov 38  }
  0x3a   :  { %s1903_s6 = sld [smem:[%s2145_s0 + %s1711_s15]]   ;;  %s1715_s15 = smov 39  }
  0x3b   :  { %2174 = sst [smem:[#allocation23_spill]] %s1888_s27 }
  0x3c   :  { %s1908_s27 = sld [smem:[%s2145_s0 + %s1712_s22]]  }
  0x3e   :  { %2175 = sst [smem:[#allocation24_spill]] %s1893_s4 }
  0x3f   :  { %2176 = sst [smem:[#allocation25_spill]] %s1898_s12 }
  0x40   :  { %2177 = sst [smem:[#allocation26_spill]] %s1903_s6 }
  0x41   :  { %s1913_s4 = sld [smem:[%s2145_s0 + %s1713_s28]]  }
  0x42   :  { %s1918_s12 = sld [smem:[%s2145_s0 + %s1714_s7]]  }
  0x43   :  { %s1923_s6 = sld [smem:[%s2145_s0 + %s1715_s15]]  }
  0x44   :  { %v169_v0 = vld [vmem:[%s1728_s5 + $0x30] sm:$0xff]  ;;  %v168_v1 = vld [vmem:[%s1728_s5 + $0x28] sm:$0xff]  ;;  %v167_v2 = vld [vmem:[%s1728_s5 + $0x20] sm:$0xff]  ;;  %vm250_vm0 = vcmask 1043456  }
  0x45   :  { %217 = vmatpush.msra.mxu0 %v169_v0  ;;  %311 = vmatpush.msra.mxu2 %v169_v0  ;;  %v166_v3 = vld [vmem:[%s1728_s5 + $0x18] sm:$0xff]  ;;  %v165_v4 = vld [vmem:[%s1728_s5 + $0x10] sm:$0xff]  ;;  %v164_v7 = vld [vmem:[%s1728_s5 + $0x8] sm:$0xff] }
  0x46   :  { %v185_v5 = vld [vmem:[%s1748_s21 + $0x18] sm:$0xf]  ;;  %v184_v6 = vld [vmem:[%s1748_s21 + $0x10] sm:$0xff] }
  0x47   :  { %218 = vmatpush.msra.mxu0 %v168_v1  ;;  %312 = vmatpush.msra.mxu2 %v168_v1 }
  0x48   :  { %1524 = vmatpush.msk.msra.mxu1 %vm250_vm0, %v185_v5 }
  0x49   :  { %219 = vmatpush.msra.mxu0 %v167_v2  ;;  %313 = vmatpush.msra.mxu2 %v167_v2 }
  0x4b   :  { %220 = vmatpush.msra.mxu0 %v166_v3  ;;  %314 = vmatpush.msra.mxu2 %v166_v3 }
  0x4c   :  { %84 = vsyncpa [#allocation3], 0  ;;  %v183_v8 = vld [vmem:[%s1748_s21 + $0x8] sm:$0xff]  ;;  %v163_v9 = vld [vmem:[%s1728_s5] sm:$0xff]  ;;  %267 = vmatpush.msra.mxu1 %v184_v6  ;;  %vm195_vm1 = vcmask 457728   ;;  %vm237_vm2 = vcmask 228352  }
  0x4d   :  { %221 = vmatpush.msra.mxu0 %v165_v4  ;;  %315 = vmatpush.msra.mxu2 %v165_v4  ;;  %v170_v10 = vld [vmem:[%s1733_s9] sm:$0xff]  ;;  %v171_v12 = vld [vmem:[%s1733_s9 + $0x8] sm:$0xff]  ;;  %v172_v14 = vld [vmem:[%s1733_s9 + $0x10] sm:$0xff]  ;;  %vm488_vm3 = vcmask 850944   ;;  %vm494_vm4 = vcmask 844800   ;;  %vm534_vm6 = vcmask 64512  }
  0x4e   :  { %v174_v11 = vld [vmem:[%s1738_s13] sm:$0xff]  ;;  %268 = vmatpush.msra.mxu1 %v183_v8  ;;  %v175_v13 = vld [vmem:[%s1738_s13 + $0x8] sm:$0xff]  ;;  %v176_v15 = vld [vmem:[%s1738_s13 + $0x10] sm:$0xff]  ;;  %vm704_vm10 = vcmask 1041408   ;;  %s2178_s0 = sld [smem:[#allocation5_spill]]  ;;  %vm697_vm11 = vcmask 211968  }
  0x4f   :  { %222 = vmatpush.msra.mxu0 %v164_v7  ;;  %316 = vmatpush.msra.mxu2 %v164_v7  ;;  %v173_v16 = vld [vmem:[%s1733_s9 + $0x18] sm:$0x3]  ;;  %v182_v18 = vld [vmem:[%s1748_s21] sm:$0xff]  ;;  %v188_v20 = vld [vmem:[%s1753_s25 + $0x10] sm:$0xff]  ;;  %s2179_s5 = sld [smem:[#allocation6_spill]]  ;;  %vm896_vm12 = vcmask 392192  }
  0x50   :  { %v177_v17 = vld [vmem:[%s1738_s13 + $0x18] sm:$0x3]  ;;  %269 = vmatpush.msra.mxu1 %v182_v18  ;;  %v187_v21 = vld [vmem:[%s1753_s25 + $0x8] sm:$0xff]  ;;  %v186_v22 = vld [vmem:[%s1753_s25] sm:$0xff]  ;;  %s2180_s9 = sld [smem:[#allocation7_spill]]  ;;  %vm898_vm13 = vcmask 388096  }
  0x51   :  { %223 = vmatpush.msra.mxu0 %v163_v9  ;;  %317 = vmatpush.msra.mxu2 %v163_v9  ;;  %v189_v19 = vld [vmem:[%s1753_s25 + $0x18] sm:$0xf]  ;;  %v178_v31 = vld [vmem:[%s1743_s17] sm:$0xff]  ;;  %v179_v32 = vld [vmem:[%s1743_s17 + $0x8] sm:$0xff]  ;;  %s2181_s13 = sld [smem:[#allocation8_spill]]  ;;  %s1472_s11 = sshll.u32 %s1923_s6, 4  ;;  %s1473_s11 = int_to_ptr.hbm [resolvable:$true] %s1472_s11 }
  0x52   :  { %1520 = vmatmul.msk.f32.vlgmr.msra.gmra.mxu0 %vm195_vm1, %v170_v10  ;;  %1529 = vmatmul.msk.f32.vlgmr.msra.gmra.mxu2 %vm195_vm1, %v174_v11  ;;  %v180_v33 = vld [vmem:[%s1743_s17 + $0x10] sm:$0xff]  ;;  %v181_v34 = vld [vmem:[%s1743_s17 + $0x18] sm:$0x3]  ;;  %v191_v37 = vld [vmem:[%s1758_s29 + $0x8] sm:$0xff]  ;;  %s2182_s17 = sld [smem:[#allocation12_spill]]  ;;  %s1667_s16 = scalar_lea.hbm %s1923_s6, 2 }
  0x53   :  { %1533 = vmatpush.msk.msra.mxu3 %vm250_vm0, %v189_v19  ;;  %400 = vmatpush.msrb.mxu1 %v169_v0  ;;  %v193_v35 = vld [vmem:[%s1758_s29 + $0x18] sm:$0xf]  ;;  %v192_v36 = vld [vmem:[%s1758_s29 + $0x10] sm:$0xff]  ;;  %v190_v38 = vld [vmem:[%s1758_s29] sm:$0xff]  ;;  %s2183_s21 = sld [smem:[#allocation9_spill]] }
  0x54   :  { %v486_v50 = vld [vmem:[%s1778_s19 + $0x60] sm:$0xff]  ;;  %v485_v51 = vld [vmem:[%s1778_s19 + $0x58] sm:$0xff]  ;;  %v484_v52 = vld [vmem:[%s1778_s19 + $0x50] sm:$0xff]  ;;  %s2184_s25 = sld [smem:[#allocation13_spill]] }
  0x55   :  { %359 = vmatpush.msra.mxu3 %v188_v20  ;;  %401 = vmatpush.msrb.mxu1 %v168_v1  ;;  %v483_v54 = vld [vmem:[%s1778_s19 + $0x48] sm:$0xff]  ;;  %v482_v55 = vld [vmem:[%s1778_s19 + $0x40] sm:$0xff]  ;;  %v481_v56 = vld [vmem:[%s1778_s19 + $0x38] sm:$0xff]  ;;  %s2185_s29 = sld [smem:[#allocation10_spill]] }
  0x56   :  { %509 = vmatpush.msrb.mxu0 %v486_v50  ;;  %v480_v57 = vld [vmem:[%s1778_s19 + $0x30] sm:$0xff]  ;;  %v479_v59 = vld [vmem:[%s1778_s19 + $0x28] sm:$0xff]  ;;  %v478_v60 = vld [vmem:[%s1778_s19 + $0x20] sm:$0xff]  ;;  %s2193_s22 = sld [smem:[#allocation23_spill]] }
  0x57   :  { %360 = vmatpush.msra.mxu3 %v187_v21  ;;  %402 = vmatpush.msrb.mxu1 %v167_v2  ;;  %v477_v61 = vld [vmem:[%s1778_s19 + $0x18] sm:$0xff]  ;;  %v476_v62 = vld [vmem:[%s1778_s19 + $0x10] sm:$0xff]  ;;  %v475_v63 = vld [vmem:[%s1778_s19 + $0x8] sm:$0xff]  ;;  %s2194_s23 = sld [smem:[#allocation20_spill]] }
  0x58   :  { %510 = vmatpush.msrb.mxu0 %v485_v51  ;;  %v474_v1 = vld [vmem:[%s1778_s19] sm:$0xff]  ;;  %s2189_s19 = sld [smem:[#allocation14_spill]] }
  0x59   :  { %361 = vmatpush.msra.mxu3 %v186_v22  ;;  %403 = vmatpush.msrb.mxu1 %v166_v3  ;;  %v1632_v2 = vld [vmem:[%s1763_s3] ss:$0 sm:$0xff]  ;;  %s2186_s3 = sld [smem:[#allocation17_spill]] }
  0x5a   :  { %1521 = vmatmul.msk.f32.gmra.mxu0 %vm195_vm1, %v171_v12  ;;  %1530 = vmatmul.msk.f32.gmra.mxu2 %vm195_vm1, %v175_v13  ;;  %s2195_s26 = sld [smem:[#allocation24_spill]] }
  0x5b   :  { %404 = vmatpush.msrb.mxu1 %v165_v4  ;;  %1542 = vmatpush.msk.msrb.mxu3 %vm250_vm0, %v193_v35  ;;  %v487_v4 = vld [vmem:[%s1783_s24] sm:$0xff]  ;;  %v1716_v35 = vmov 338.0   ;;  %s2190_s24 = sld [smem:[#allocation15_spill]] }
  0x5c   :  { %511 = vmatpush.msrb.mxu0 %v484_v52  ;;  %553 = vmatpush.msrb.mxu2 %v487_v4  ;;  %1639 = vrcp.f32 %v1716_v35  ;;  %v659_v35 = vld [vmem:[%s1803_s20 + $0x10] sm:$0xff]  ;;  %s2196_s28 = sld [smem:[#allocation21_spill]] }
  0x5d   :  { %405 = vmatpush.msrb.mxu1 %v164_v7  ;;  %448 = vmatpush.msrb.mxu3 %v192_v36  ;;  %s2197_s1 = sld [smem:[#allocation26_spill]] }
  0x5e   :  { %512 = vmatpush.msrb.mxu0 %v483_v54  ;;  %634 = vmatpush.msra.mxu2 %v487_v4  ;;  %s2198_s2 = sld [smem:[#allocation22_spill]] }
  0x5f   :  { %406 = vmatpush.msrb.mxu1 %v163_v9  ;;  %449 = vmatpush.msrb.mxu3 %v191_v37  ;;  %s2199_s7 = sld [smem:[#allocation25_spill]] }
  0x60   :  { %513 = vmatpush.msrb.mxu0 %v482_v55 }
  0x61   :  { %450 = vmatpush.msrb.mxu3 %v190_v38 }
  0x62   :  { %1522 = vmatmul.msk.f32.gmra.mxu0 %vm195_vm1, %v172_v14  ;;  %1531 = vmatmul.msk.f32.gmra.mxu2 %vm195_vm1, %v176_v15  ;;  %v1640_v36 = vpop.eup %1639 }
  0x63   :  { %514 = vmatpush.msrb.mxu0 %v481_v56  ;;  %v527_v37 = vmul.f32 338.0, %v1640_v36  ;;  %vm531_vm5 = vweird.f32 %v1640_v36 }
  0x65   :  { %515 = vmatpush.msrb.mxu0 %v480_v57  ;;  %v528_v38 = vsub.f32 1.0, %v527_v37  ;;  %v651_v37 = vld [vmem:[%s1788_s30] sm:$0xff] }
  0x67   :  { %516 = vmatpush.msrb.mxu0 %v479_v59 }
  0x69   :  { %517 = vmatpush.msrb.mxu0 %v478_v60 }
  0x6a   :  { %1523 = vmatmul.msk.f32.gmra.mxu0 %vm195_vm1, %v173_v16  ;;  %1532 = vmatmul.msk.f32.gmra.mxu2 %vm195_vm1, %v177_v17 }
  0x6b   :  { %518 = vmatpush.msrb.mxu0 %v477_v61 }
  0x6d   :  { %519 = vmatpush.msrb.mxu0 %v476_v62 }
  0x6f   :  { %520 = vmatpush.msrb.mxu0 %v475_v63 }
  0x71   :  { %521 = vmatpush.msrb.mxu0 %v474_v1 }
  0x73   :  { %586 = vmatpush.msra.mxu0 %v486_v50 }
  0x75   :  { %587 = vmatpush.msra.mxu0 %v485_v51 }
  0x77   :  { %588 = vmatpush.msra.mxu0 %v484_v52 }
  0x79   :  { %589 = vmatpush.msra.mxu0 %v483_v54 }
  0x7b   :  { %590 = vmatpush.msra.mxu0 %v482_v55 }
  0x7d   :  { %591 = vmatpush.msra.mxu0 %v481_v56 }
  0x7f   :  { %592 = vmatpush.msra.mxu0 %v480_v57 }
  0x81   :  { %593 = vmatpush.msra.mxu0 %v479_v59 }
  0x83   :  { %594 = vmatpush.msra.mxu0 %v478_v60 }
  0x85   :  { %595 = vmatpush.msra.mxu0 %v477_v61 }
  0x87   :  { %596 = vmatpush.msra.mxu0 %v476_v62 }
  0x89   :  { %597 = vmatpush.msra.mxu0 %v475_v63 }
  0x8b   :  { %598 = vmatpush.msra.mxu0 %v474_v1 }
  0xcf   :  { %v225_v23 = vpop.f32.mrf.mxu0 }
  0xd0   :  { %1525 = vmatmul.msk.f32.vlgmr.msra.gmra.mxu1 %vm237_vm2, %v225_v23 }
  0xd5   :  { %v319_v24 = vpop.f32.mrf.mxu2 }
  0xd6   :  { %1534 = vmatmul.msk.f32.vlgmr.msra.gmra.mxu3 %vm237_vm2, %v319_v24 }
  0xd7   :  { %v228_v25 = vpop.f32.mrf.mxu0 }
  0xd8   :  { %1526 = vmatmul.msk.f32.gmra.mxu1 %vm237_vm2, %v228_v25 }
  0xdd   :  { %v322_v26 = vpop.f32.mrf.mxu2 }
  0xde   :  { %1535 = vmatmul.msk.f32.gmra.mxu3 %vm237_vm2, %v322_v26 }
  0xdf   :  { %v231_v27 = vpop.f32.mrf.mxu0 }
  0xe0   :  { %1527 = vmatmul.msk.f32.gmra.mxu1 %vm237_vm2, %v231_v27 }
  0xe5   :  { %v325_v28 = vpop.f32.mrf.mxu2 }
  0xe6   :  { %1536 = vmatmul.msk.f32.gmra.mxu3 %vm237_vm2, %v325_v28 }
  0xe7   :  { %v234_v29 = vpop.f32.mrf.mxu0 }
  0xe8   :  { %1528 = vmatmul.msk.f32.gmra.mxu1 %vm237_vm2, %v234_v29 }
  0xed   :  { %v328_v30 = vpop.f32.mrf.mxu2 }
  0xee   :  { %1537 = vmatmul.msk.f32.gmra.mxu3 %vm237_vm2, %v328_v30 }
  0xf0   :  { %1538 = vmatmul.msk.f32.vlgmr.msrb.gmra.mxu1 %vm195_vm1, %v178_v31 }
  0xf8   :  { %1539 = vmatmul.msk.f32.gmra.mxu1 %vm195_vm1, %v179_v32 }
 0x100   :  { %1540 = vmatmul.msk.f32.gmra.mxu1 %vm195_vm1, %v180_v33 }
 0x108   :  { %1541 = vmatmul.msk.f32.gmra.mxu1 %vm195_vm1, %v181_v34 }
 0x14d   :  { %v271_v39 = vpop.f32.mrf.mxu1 }
 0x14e   :  { %v286_v5 = vadd.f32 %v1632_v2, %v271_v39  ;;  %v529_v39 = vmul.f32 %v1640_v36, %v528_v38  ;;  %v653_v38 = vld [vmem:[%s2178_s0] sm:$0xff] }
 0x155   :  { %v274_v40 = vpop.f32.mrf.mxu1 }
 0x156   :  { %v287_v3 = vadd.f32 %v1632_v2, %v274_v40  ;;  %v530_v40 = vadd.f32 %v1640_v36, %v529_v39  ;;  %v655_v39 = vld [vmem:[%s2179_s5] sm:$0xff] }
 0x159   :  { %v363_v47 = vpop.f32.mrf.mxu3 }
 0x15a   :  { %v375_v8 = vadd.f32 %v363_v47, %v286_v5 }
 0x15d   :  { %v277_v41 = vpop.f32.mrf.mxu1 }
 0x15e   :  { %v288_v6 = vadd.f32 %v1632_v2, %v277_v41  ;;  %v532_v41 = vsel %vm531_vm5, %v1640_v36, %v530_v40  ;;  %v682_v40 = vld [vmem:[%s2180_s9 + $0x60] sm:$0xff]  ;;  %vm1226_vm5 = vcmask 130048  }
 0x161   :  { %v366_v48 = vpop.f32.mrf.mxu3 }
 0x162   :  { %v376_v7 = vadd.f32 %v366_v48, %v287_v3 }
 0x165   :  { %v280_v42 = vpop.f32.mrf.mxu1 }
 0x166   :  { %v289_v15 = vadd.f32 %v1632_v2, %v280_v42 }
 0x169   :  { %v369_v49 = vpop.f32.mrf.mxu3 }
 0x16a   :  { %v377_v9 = vadd.f32 %v369_v49, %v288_v6 }
 0x16d   :  { %v408_v43 = vpop.f32.mrf.mxu1 }
 0x16e   :  { %1543 = vmatmul.msk.f32.vlgmr.msrb.gmra.mxu3 %vm237_vm2, %v408_v43 }
 0x171   :  { %v372_v53 = vpop.f32.mrf.mxu3 }
 0x172   :  { %v378_v18 = vadd.f32 %v372_v53, %v289_v15  ;;  %v669_v15 = vld [vmem:[%s1803_s20 + $0x60] sm:$0xff] }
 0x173   :  { %740 = vmatpush.msra.mxu1 %v669_v15  ;;  %v893_v15 = vld [vmem:[%s2182_s17 + $0x20] sm:$0xff] }
 0x175   :  { %v411_v44 = vpop.f32.mrf.mxu1 }
 0x176   :  { %1544 = vmatmul.msk.f32.gmra.mxu3 %vm237_vm2, %v411_v44 }
 0x17d   :  { %v414_v45 = vpop.f32.mrf.mxu1 }
 0x17e   :  { %1545 = vmatmul.msk.f32.gmra.mxu3 %vm237_vm2, %v414_v45 }
 0x185   :  { %v417_v46 = vpop.f32.mrf.mxu1 }
 0x186   :  { %1546 = vmatmul.msk.f32.gmra.mxu3 %vm237_vm2, %v417_v46 }
 0x1f1   :  { %v452_v58 = vpop.f32.mrf.mxu3 }
 0x1f2   :  { %v464_v12 = vadd.f32 %v452_v58, %v375_v8 }
 0x1f4   :  { %v468_v16 = vmax.f32 %v464_v12, 0.0 }
 0x1f6   :  { %v489_v21 = vsel %vm488_vm3, %v468_v16, 0.0 }
 0x1f9   :  { %v455_v0 = vpop.f32.mrf.mxu3 }
 0x1fa   :  { %v465_v10 = vadd.f32 %v455_v0, %v376_v7 }
 0x1fc   :  { %v469_v14 = vmax.f32 %v465_v10, 0.0 }
 0x1fe   :  { %v490_v19 = vsel %vm488_vm3, %v469_v14, 0.0 }
 0x1ff   :  { %v491_v24 = vadd.f32 %v490_v19, %v489_v21  ;;  %v665_v19 = vld [vmem:[%s1803_s20 + $0x40] sm:$0xff] }
 0x201   :  { %v458_v11 = vpop.f32.mrf.mxu3 }
 0x202   :  { %v466_v13 = vadd.f32 %v458_v11, %v377_v9  ;;  %v472_v11 = vld [vmem:[%s1768_s8] sm:$0x1]  ;;  %s2187_s8 = sld [smem:[#allocation18_spill]] }
 0x204   :  { %v470_v17 = vmax.f32 %v466_v13, 0.0 }
 0x206   :  { %v492_v22 = vsel %vm488_vm3, %v470_v17, 0.0 }
 0x207   :  { %v493_v26 = vadd.f32 %v492_v22, %v491_v24  ;;  %v663_v24 = vld [vmem:[%s1803_s20 + $0x30] sm:$0xff] }
 0x209   :  { %v461_v20 = vpop.f32.mrf.mxu3 }
 0x20a   :  { %v467_v23 = vadd.f32 %v461_v20, %v378_v18  ;;  %v666_v18 = vld [vmem:[%s1803_s20 + $0x48] sm:$0xff]  ;;  %v664_v20 = vld [vmem:[%s1803_s20 + $0x38] sm:$0xff] }
 0x20c   :  { %v471_v25 = vmax.f32 %v467_v23, 0.0  ;;  %v1633_v23 = vld [vmem:[%s1773_s14] ss:$0 sm:$0xff]  ;;  %s2188_s14 = sld [smem:[#allocation11_spill]] }
 0x20e   :  { %v495_v27 = vsel %vm494_vm4, %v471_v25, 0.0 }
 0x20f   :  { %v496_v28 = vadd.f32 %v495_v27, %v493_v26  ;;  %v662_v27 = vld [vmem:[%s1803_s20 + $0x28] sm:$0xff] }
 0x211   :  { %v497_v29 = vrot.slane %v496_v28, 4 }
 0x213   :  { %v498_v30 = vadd.f32 %v497_v29, %v496_v28 }
 0x215   :  { %v499_v31 = vrot.slane %v498_v30, 2 }
 0x217   :  { %v500_v32 = vadd.f32 %v499_v31, %v498_v30  ;;  %v661_v30 = vld [vmem:[%s1803_s20 + $0x20] sm:$0xff] }
 0x219   :  { %v501_v33 = vrot.slane %v500_v32, 1 }
 0x21b   :  { %v502_v34 = vadd.f32 %v501_v33, %v500_v32  ;;  %v660_v33 = vld [vmem:[%s1803_s20 + $0x18] sm:$0xff] }
 0x21d   :  { %1547 = vmatmul.msk.f32.vlgmr.msrb.gmra.mxu0 %vm488_vm3, %v502_v34 }
 0x29a   :  { %v523_v42 = vpop.f32.mrf.mxu0 }
 0x29b   :  { %v533_v43 = vmul.f32 %v532_v41, %v523_v42  ;;  %v681_v42 = vld [vmem:[%s2180_s9 + $0x58] sm:$0xff] }
 0x29d   :  { %1548 = vmatmul.msk.f32.vlgmr.msrb.gmra.mxu2 %vm534_vm6, %v533_v43  ;;  %v657_v43 = vld [vmem:[%s1803_s20] sm:$0xff] }
 0x320   :  { %v555_v44 = vpop.f32.mrf.mxu2 }
 0x321   :  { %v558_v45 = vperm.slane %v555_v44, 0  ;;  %v695_v44 = vld [vmem:[%s2181_s13 + $0x60] sm:$0xff] }
 0x323   :  { %v2004_v46 = vsub.f32 %v468_v16, %v558_v45  ;;  %v560_v47 = vsub.f32 %v469_v14, %v558_v45  ;;  %v561_v48 = vsub.f32 %v470_v17, %v558_v45  ;;  %v562_v49 = vsub.f32 %v471_v25, %v558_v45  ;;  %v668_v16 = vld [vmem:[%s1803_s20 + $0x58] sm:$0xff]  ;;  %v667_v17 = vld [vmem:[%s1803_s20 + $0x50] sm:$0xff] }
 0x324   :  { %741 = vmatpush.msra.mxu1 %v668_v16  ;;  %v680_v45 = vld [vmem:[%s2180_s9 + $0x50] sm:$0xff]  ;;  %v892_v16 = vld [vmem:[%s2182_s17 + $0x18] sm:$0xff] }
 0x325   :  { %v563_v50 = vmul.f32 %v2004_v46, %v2004_v46  ;;  %v564_v51 = vmul.f32 %v560_v47, %v560_v47  ;;  %v565_v52 = vmul.f32 %v561_v48, %v561_v48  ;;  %v566_v53 = vmul.f32 %v562_v49, %v562_v49 }
 0x326   :  { %742 = vmatpush.msra.mxu1 %v667_v17  ;;  %v891_v17 = vld [vmem:[%s2182_s17 + $0x10] sm:$0xff] }
 0x327   :  { %v567_v54 = vsel %vm488_vm3, %v563_v50, 0.0  ;;  %v568_v55 = vsel %vm488_vm3, %v564_v51, 0.0  ;;  %v570_v57 = vsel %vm488_vm3, %v565_v52, 0.0  ;;  %v572_v59 = vsel %vm494_vm4, %v566_v53, 0.0  ;;  %v679_v50 = vld [vmem:[%s2180_s9 + $0x48] sm:$0xff]  ;;  %v693_v51 = vld [vmem:[%s2181_s13 + $0x50] sm:$0xff] }
 0x328   :  { %v569_v56 = vadd.f32 %v568_v55, %v567_v54  ;;  %743 = vmatpush.msra.mxu1 %v666_v18  ;;  %v678_v52 = vld [vmem:[%s2180_s9 + $0x40] sm:$0xff]  ;;  %v692_v53 = vld [vmem:[%s2181_s13 + $0x48] sm:$0xff]  ;;  %v677_v54 = vld [vmem:[%s2180_s9 + $0x38] sm:$0xff]  ;;  %vm1218_vm4 = vcmask 125952  }
 0x329   :  { %v676_v55 = vld [vmem:[%s2180_s9 + $0x30] sm:$0xff] }
 0x32a   :  { %v571_v58 = vadd.f32 %v570_v57, %v569_v56  ;;  %744 = vmatpush.msra.mxu1 %v665_v19  ;;  %v675_v56 = vld [vmem:[%s2180_s9 + $0x28] sm:$0xff]  ;;  %v674_v57 = vld [vmem:[%s2180_s9 + $0x20] sm:$0xff] }
 0x32b   :  { %v890_v19 = vld [vmem:[%s2182_s17 + $0x8] sm:$0xff] }
 0x32c   :  { %v573_v60 = vadd.f32 %v572_v59, %v571_v58  ;;  %745 = vmatpush.msra.mxu1 %v664_v20  ;;  %v673_v58 = vld [vmem:[%s2180_s9 + $0x18] sm:$0xff]  ;;  %v672_v59 = vld [vmem:[%s2180_s9 + $0x10] sm:$0xff] }
 0x32e   :  { %v574_v61 = vrot.slane %v573_v60, 4  ;;  %746 = vmatpush.msra.mxu1 %v663_v24 }
 0x330   :  { %v575_v62 = vadd.f32 %v574_v61, %v573_v60  ;;  %747 = vmatpush.msra.mxu1 %v662_v27  ;;  %v671_v60 = vld [vmem:[%s2180_s9 + $0x8] sm:$0xff]  ;;  %v670_v61 = vld [vmem:[%s2180_s9] sm:$0xff] }
 0x332   :  { %v576_v63 = vrot.slane %v575_v62, 2  ;;  %748 = vmatpush.msra.mxu1 %v661_v30 }
 0x334   :  { %v577_v0 = vadd.f32 %v576_v63, %v575_v62  ;;  %749 = vmatpush.msra.mxu1 %v660_v33  ;;  %v691_v62 = vld [vmem:[%s2181_s13 + $0x40] sm:$0xff]  ;;  %v690_v63 = vld [vmem:[%s2181_s13 + $0x38] sm:$0xff] }
 0x336   :  { %v578_v1 = vrot.slane %v577_v0, 1  ;;  %750 = vmatpush.msra.mxu1 %v659_v35 }
 0x338   :  { %v579_v2 = vadd.f32 %v578_v1, %v577_v0  ;;  %v689_v0 = vld [vmem:[%s2181_s13 + $0x30] sm:$0xff]  ;;  %v688_v1 = vld [vmem:[%s2181_s13 + $0x28] sm:$0xff] }
 0x33a   :  { %1549 = vmatmul.msk.f32.vlgmr.msra.gmra.mxu0 %vm488_vm3, %v579_v2  ;;  %v687_v2 = vld [vmem:[%s2181_s13 + $0x20] sm:$0xff] }
 0x3b7   :  { %v600_v3 = vpop.f32.mrf.mxu0 }
 0x3b8   :  { %v603_v4 = vmul.f32 %v600_v3, %v532_v41  ;;  %v658_v41 = vld [vmem:[%s1803_s20 + $0x8] sm:$0xff]  ;;  %v686_v3 = vld [vmem:[%s2181_s13 + $0x18] sm:$0xff]  ;;  %s2192_s20 = sld [smem:[#allocation19_spill]] }
 0x3b9   :  { %751 = vmatpush.msra.mxu1 %v658_v41 }
 0x3ba   :  { %v604_v5 = vadd.f32 1e-05, %v603_v4  ;;  %v685_v4 = vld [vmem:[%s2181_s13 + $0x10] sm:$0xff] }
 0x3bb   :  { %752 = vmatpush.msra.mxu1 %v657_v43  ;;  %v895_v43 = vld [vmem:[%s2184_s25] sm:$0xff] }
 0x3bc   :  { %1641 = vrsqrt.f32 %v604_v5  ;;  %vm611_vm8 = vweird.f32 %v604_v5 }
 0x3bd   :  { %863 = vmatpush.msrb.mxu1 %v695_v44  ;;  %v1717_v44 = vmov 72.0  }
 0x3be   :  { %1643 = vrcp.f32 %v1717_v44 }
 0x3c2   :  { %v1642_v6 = vpop.eup %1641 }
 0x3c3   :  { %v606_v7 = vmul.f32 %v1642_v6, %v604_v5  ;;  %vm612_vm7 = vweird.f32 %v1642_v6  ;;  %v684_v5 = vld [vmem:[%s2181_s13 + $0x8] sm:$0xff] }
 0x3c4   :  { %vm613_vm9 = vmor %vm611_vm8, %vm612_vm7 }
 0x3c5   :  { %v607_v8 = vmul.f32 %v1642_v6, %v606_v7 }
 0x3c7   :  { %v608_v9 = vmul.f32 0.5, %v607_v8 }
 0x3c9   :  { %v609_v10 = vsub.f32 1.5, %v608_v9 }
 0x3cb   :  { %v610_v12 = vmul.f32 %v1642_v6, %v609_v10 }
 0x3cd   :  { %v614_v13 = vsel %vm613_vm9, %v1642_v6, %v610_v12  ;;  %v683_v6 = vld [vmem:[%s2181_s13] sm:$0xff] }
 0x3ce   :  { %v615_v14 = vmul.f32 %v614_v13, %v472_v11 }
 0x3d0   :  { %1550 = vmatmul.msk.f32.vlgmr.msra.gmra.mxu2 %vm534_vm6, %v615_v14  ;;  %v894_v14 = vld [vmem:[%s2182_s17 + $0x28] sm:$0xff] }
 0x453   :  { %v636_v21 = vpop.f32.mrf.mxu2 }
 0x454   :  { %v639_v22 = vperm.slane %v636_v21, 0  ;;  %v889_v21 = vld [vmem:[%s2182_s17] sm:$0xff] }
 0x456   :  { %v643_v25 = vmul.f32 %v639_v22, %v562_v49  ;;  %v642_v26 = vmul.f32 %v639_v22, %v561_v48  ;;  %v641_v29 = vmul.f32 %v639_v22, %v560_v47  ;;  %v640_v32 = vmul.f32 %v639_v22, %v2004_v46  ;;  %v694_v46 = vld [vmem:[%s2181_s13 + $0x58] sm:$0xff]  ;;  %v652_v47 = vld [vmem:[%s1788_s30 + $0x8] sm:$0xf]  ;;  %v1634_v22 = vld [vmem:[%s2183_s21] ss:$0 sm:$0xff]  ;;  %s2191_s30 = sld [smem:[#allocation16_spill]] }
 0x457   :  { %v654_v48 = vld [vmem:[%s2178_s0 + $0x8] sm:$0xf]  ;;  %864 = vmatpush.msrb.mxu1 %v694_v46 }
 0x458   :  { %v650_v28 = vadd.f32 %v1633_v23, %v643_v25  ;;  %v649_v31 = vadd.f32 %v1633_v23, %v642_v26  ;;  %v648_v34 = vadd.f32 %v1633_v23, %v641_v29  ;;  %v647_v36 = vadd.f32 %v1633_v23, %v640_v32  ;;  %v656_v49 = vld [vmem:[%s2179_s5 + $0x8] sm:$0xf] }
 0x459   :  { %865 = vmatpush.msrb.mxu1 %v693_v51 }
 0x45a   :  { %1551 = vmatpush.msk.msrb.mxu2 %vm704_vm10, %v650_v28  ;;  %1556 = vmatpush.msk.msra.mxu3 %vm704_vm10, %v650_v28 }
 0x45b   :  { %1561 = vmatpush.msk.msrb.mxu0 %vm704_vm10, %v650_v28  ;;  %866 = vmatpush.msrb.mxu1 %v692_v53 }
 0x45c   :  { %721 = vmatpush.msrb.mxu2 %v649_v31  ;;  %784 = vmatpush.msra.mxu3 %v649_v31 }
 0x45d   :  { %844 = vmatpush.msrb.mxu0 %v649_v31  ;;  %867 = vmatpush.msrb.mxu1 %v691_v62 }
 0x45e   :  { %722 = vmatpush.msrb.mxu2 %v648_v34  ;;  %785 = vmatpush.msra.mxu3 %v648_v34 }
 0x45f   :  { %845 = vmatpush.msrb.mxu0 %v648_v34  ;;  %868 = vmatpush.msrb.mxu1 %v690_v63 }
 0x460   :  { %723 = vmatpush.msrb.mxu2 %v647_v36  ;;  %786 = vmatpush.msra.mxu3 %v647_v36 }
 0x461   :  { %846 = vmatpush.msrb.mxu0 %v647_v36  ;;  %1552 = vmatmul.msk.f32.vlgmr.msrb.gmra.mxu2 %vm697_vm11, %v651_v37 }
 0x462   :  { %1557 = vmatmul.msk.f32.vlgmr.msra.gmra.mxu3 %vm697_vm11, %v653_v38  ;;  %1562 = vmatmul.msk.f32.vlgmr.msrb.gmra.mxu0 %vm697_vm11, %v655_v39 }
 0x463   :  { %803 = vmatpush.msra.mxu2 %v682_v40  ;;  %869 = vmatpush.msrb.mxu1 %v689_v0 }
 0x464   :  { %920 = vmatpush.msrb.mxu3 %v894_v14  ;;  %956 = vmatpush.msra.mxu0 %v895_v43 }
 0x465   :  { %804 = vmatpush.msra.mxu2 %v681_v42  ;;  %870 = vmatpush.msrb.mxu1 %v688_v1 }
 0x466   :  { %921 = vmatpush.msrb.mxu3 %v893_v15  ;;  %1029 = vmatpush.msrb.mxu0 %v895_v43  ;;  %v1057_v43 = vld [vmem:[%s2192_s20] sm:$0xff] }
 0x467   :  { %805 = vmatpush.msra.mxu2 %v680_v45  ;;  %871 = vmatpush.msrb.mxu1 %v687_v2  ;;  %v1644_v45 = vpop.eup %1643 }
 0x468   :  { %922 = vmatpush.msrb.mxu3 %v892_v16  ;;  %v931_v46 = vmul.f32 72.0, %v1644_v45  ;;  %vm935_vm14 = vweird.f32 %v1644_v45 }
 0x469   :  { %1553 = vmatmul.msk.f32.gmra.mxu2 %vm697_vm11, %v652_v47  ;;  %872 = vmatpush.msrb.mxu1 %v686_v3 }
 0x46a   :  { %1558 = vmatmul.msk.f32.gmra.mxu3 %vm697_vm11, %v654_v48  ;;  %1563 = vmatmul.msk.f32.gmra.mxu0 %vm697_vm11, %v656_v49  ;;  %v932_v47 = vsub.f32 1.0, %v931_v46  ;;  %vm1359_vm11 = vcmask 31744  }
 0x46b   :  { %806 = vmatpush.msra.mxu2 %v679_v50  ;;  %873 = vmatpush.msrb.mxu1 %v685_v4 }
 0x46c   :  { %923 = vmatpush.msrb.mxu3 %v891_v17  ;;  %v933_v48 = vmul.f32 %v1644_v45, %v932_v47  ;;  %v1216_v47 = vld [vmem:[%s2193_s22 + $0x8] sm:$0xff] }
 0x46d   :  { %807 = vmatpush.msra.mxu2 %v678_v52  ;;  %874 = vmatpush.msrb.mxu1 %v684_v5 }
 0x46e   :  { %924 = vmatpush.msrb.mxu3 %v890_v19  ;;  %v934_v49 = vadd.f32 %v1644_v45, %v933_v48  ;;  %v1215_v48 = vld [vmem:[%s2193_s22] sm:$0xff] }
 0x46f   :  { %808 = vmatpush.msra.mxu2 %v677_v54  ;;  %875 = vmatpush.msrb.mxu1 %v683_v6 }
 0x470   :  { %925 = vmatpush.msrb.mxu3 %v889_v21  ;;  %v936_v50 = vsel %vm935_vm14, %v1644_v45, %v934_v49  ;;  %v1636_v49 = vld [vmem:[%s2194_s23] ss:$0 sm:$0xff] }
 0x471   :  { %809 = vmatpush.msra.mxu2 %v676_v55 }
 0x472   :  { %988 = vmatpush.msra.mxu3 %v894_v14 }
 0x473   :  { %810 = vmatpush.msra.mxu2 %v675_v56 }
 0x474   :  { %989 = vmatpush.msra.mxu3 %v893_v15 }
 0x475   :  { %811 = vmatpush.msra.mxu2 %v674_v57 }
 0x476   :  { %990 = vmatpush.msra.mxu3 %v892_v16  ;;  %v1050_v16 = vld [vmem:[%s2186_s3 + $0x28] sm:$0xff] }
 0x477   :  { %812 = vmatpush.msra.mxu2 %v673_v58 }
 0x478   :  { %991 = vmatpush.msra.mxu3 %v891_v17  ;;  %v1049_v17 = vld [vmem:[%s2186_s3 + $0x20] sm:$0xff] }
 0x479   :  { %813 = vmatpush.msra.mxu2 %v672_v59 }
 0x47a   :  { %992 = vmatpush.msra.mxu3 %v890_v19  ;;  %v1056_v19 = vld [vmem:[%s2187_s8 + $0x28] sm:$0xff] }
 0x47b   :  { %814 = vmatpush.msra.mxu2 %v671_v60 }
 0x47c   :  { %993 = vmatpush.msra.mxu3 %v889_v21  ;;  %v1046_v21 = vld [vmem:[%s2186_s3 + $0x8] sm:$0xff] }
 0x47d   :  { %815 = vmatpush.msra.mxu2 %v670_v61 }
 0x4df   :  { %v848_v11 = vpop.f32.mrf.mxu0 }
 0x4e4   :  { %v725_v7 = vpop.f32.mrf.mxu2 }
 0x4e5   :  { %v788_v8 = vpop.f32.mrf.mxu3  ;;  %1554 = vmatmul.msk.f32.vlgmr.msra.gmra.mxu1 %vm488_vm3, %v725_v7 }
 0x4e6   :  { %1559 = vmatmul.msk.f32.vlgmr.msra.gmra.mxu2 %vm488_vm3, %v788_v8  ;;  %1154 = vmatpush.msra.mxu1 %v1056_v19 }
 0x4e7   :  { %v851_v12 = vpop.f32.mrf.mxu0 }
 0x4ec   :  { %v728_v9 = vpop.f32.mrf.mxu2 }
 0x4ed   :  { %v791_v10 = vpop.f32.mrf.mxu3  ;;  %1555 = vmatmul.msk.f32.gmra.mxu1 %vm488_vm3, %v728_v9 }
 0x4ee   :  { %1560 = vmatmul.msk.f32.gmra.mxu2 %vm488_vm3, %v791_v10 }
 0x4f5   :  { %1564 = vmatmul.msk.f32.vlgmr.msrb.gmra.mxu1 %vm488_vm3, %v848_v11 }
 0x4fd   :  { %1565 = vmatmul.msk.f32.gmra.mxu1 %vm488_vm3, %v851_v12  ;;  %v887_v12 = vld [vmem:[%s2185_s29] sm:$0x1]  ;;  %vm1064_vm3 = vcmask 97280  }
 0x562   :  { %v754_v13 = vpop.f32.mrf.mxu1 }
 0x563   :  { %v763_v24 = vadd.f32 %v1634_v22, %v754_v13 }
 0x569   :  { %v817_v20 = vpop.f32.mrf.mxu2 }
 0x56a   :  { %v757_v18 = vpop.f32.mrf.mxu1  ;;  %v823_v25 = vadd.f32 %v817_v20, %v763_v24  ;;  %v1047_v20 = vld [vmem:[%s2186_s3 + $0x10] sm:$0xff]  ;;  %v1635_v24 = vld [vmem:[%s2188_s14] ss:$0 sm:$0xff] }
 0x56b   :  { %v764_v27 = vadd.f32 %v1634_v22, %v757_v18  ;;  %v1048_v18 = vld [vmem:[%s2186_s3 + $0x18] sm:$0xff] }
 0x571   :  { %v820_v26 = vpop.f32.mrf.mxu2 }
 0x572   :  { %v877_v23 = vpop.f32.mrf.mxu1  ;;  %v824_v29 = vadd.f32 %v820_v26, %v764_v27 }
 0x573   :  { %v883_v28 = vadd.f32 %v877_v23, %v823_v25 }
 0x575   :  { %v885_v31 = vmax.f32 %v883_v28, 0.0 }
 0x577   :  { %v897_v34 = vsel %vm896_vm12, %v885_v31, 0.0 }
 0x57a   :  { %v880_v30 = vpop.f32.mrf.mxu1 }
 0x57b   :  { %v884_v32 = vadd.f32 %v880_v30, %v824_v29  ;;  %v1042_v29 = vld [vmem:[%s2189_s19] sm:$0xf] }
 0x57c   :  { %v1043_v30 = vld [vmem:[%s2190_s24] sm:$0xf] }
 0x57d   :  { %v886_v33 = vmax.f32 %v884_v32, 0.0  ;;  %v1045_v32 = vld [vmem:[%s2186_s3] sm:$0xff] }
 0x57f   :  { %v899_v35 = vsel %vm898_vm13, %v886_v33, 0.0 }
 0x580   :  { %v900_v36 = vadd.f32 %v899_v35, %v897_v34  ;;  %v1062_v34 = vld [vmem:[%s2192_s20 + $0x28] sm:$0xff]  ;;  %v1054_v35 = vld [vmem:[%s2187_s8 + $0x18] sm:$0xff] }
 0x582   :  { %v901_v37 = vrot.slane %v900_v36, 4 }
 0x584   :  { %v902_v38 = vadd.f32 %v901_v37, %v900_v36  ;;  %v1061_v36 = vld [vmem:[%s2192_s20 + $0x20] sm:$0xff]  ;;  %v1053_v37 = vld [vmem:[%s2187_s8 + $0x10] sm:$0xff] }
 0x586   :  { %v903_v39 = vrot.slane %v902_v38, 2 }
 0x588   :  { %v904_v40 = vadd.f32 %v903_v39, %v902_v38  ;;  %v1060_v38 = vld [vmem:[%s2192_s20 + $0x18] sm:$0xff]  ;;  %v1052_v39 = vld [vmem:[%s2187_s8 + $0x8] sm:$0xff] }
 0x58a   :  { %v905_v41 = vrot.slane %v904_v40, 1 }
 0x58c   :  { %v906_v42 = vadd.f32 %v905_v41, %v904_v40  ;;  %v1059_v40 = vld [vmem:[%s2192_s20 + $0x10] sm:$0xff]  ;;  %v1051_v41 = vld [vmem:[%s2187_s8] sm:$0xff] }
 0x58e   :  { %1566 = vmatmul.msk.f32.vlgmr.msrb.gmra.mxu3 %vm896_vm12, %v906_v42  ;;  %v1058_v42 = vld [vmem:[%s2192_s20 + $0x8] sm:$0xff] }
 0x58f   :  { %1104 = vmatpush.msrb.mxu3 %v1050_v16 }
 0x591   :  { %1105 = vmatpush.msrb.mxu3 %v1049_v17 }
 0x593   :  { %1106 = vmatpush.msrb.mxu3 %v1048_v18 }
 0x595   :  { %1107 = vmatpush.msrb.mxu3 %v1047_v20 }
 0x597   :  { %1108 = vmatpush.msrb.mxu3 %v1046_v21 }
 0x599   :  { %1109 = vmatpush.msrb.mxu3 %v1045_v32 }
 0x611   :  { %v927_v51 = vpop.f32.mrf.mxu3 }
 0x612   :  { %v937_v52 = vmul.f32 %v936_v50, %v927_v51 }
 0x614   :  { %1567 = vmatmul.msk.f32.vlgmr.msra.gmra.mxu0 %vm534_vm6, %v937_v52 }
 0x691   :  { %v958_v53 = vpop.f32.mrf.mxu0 }
 0x692   :  { %v961_v54 = vperm.slane %v958_v53, 0 }
 0x694   :  { %v962_v55 = vsub.f32 %v885_v31, %v961_v54  ;;  %v963_v56 = vsub.f32 %v886_v33, %v961_v54  ;;  %v1044_v31 = vld [vmem:[%s2191_s30] sm:$0xf] }
 0x695   :  { %v1055_v33 = vld [vmem:[%s2187_s8 + $0x20] sm:$0xff] }
 0x696   :  { %v964_v57 = vmul.f32 %v962_v55, %v962_v55  ;;  %v965_v58 = vmul.f32 %v963_v56, %v963_v56  ;;  %1155 = vmatpush.msra.mxu1 %v1055_v33  ;;  %v1358_v33 = vld [vmem:[%s2197_s1 + $0x8] sm:$0xff] }
 0x698   :  { %v966_v59 = vsel %vm896_vm12, %v964_v57, 0.0  ;;  %v967_v60 = vsel %vm898_vm13, %v965_v58, 0.0  ;;  %1156 = vmatpush.msra.mxu1 %v1054_v35  ;;  %v1388_v35 = vld [vmem:[%s1913_s4 + $0x8] sm:$0xff] }
 0x699   :  { %v968_v61 = vadd.f32 %v967_v60, %v966_v59 }
 0x69a   :  { %1157 = vmatpush.msra.mxu1 %v1053_v37 }
 0x69b   :  { %v969_v62 = vrot.slane %v968_v61, 4 }
 0x69c   :  { %1158 = vmatpush.msra.mxu1 %v1052_v39 }
 0x69d   :  { %v970_v63 = vadd.f32 %v969_v62, %v968_v61 }
 0x69e   :  { %1159 = vmatpush.msra.mxu1 %v1051_v41  ;;  %v1356_v41 = vld [vmem:[%s2199_s7] sm:$0x3] }
 0x69f   :  { %v971_v0 = vrot.slane %v970_v63, 2 }
 0x6a0   :  { %1308 = vmatpush.msrb.mxu1 %v1216_v47 }
 0x6a1   :  { %v972_v1 = vadd.f32 %v971_v0, %v970_v63  ;;  %v1217_v0 = vld [vmem:[%s2195_s26] sm:$0xff] }
 0x6a2   :  { %1309 = vmatpush.msrb.mxu1 %v1215_v48 }
 0x6a3   :  { %v973_v2 = vrot.slane %v972_v1, 1 }
 0x6a5   :  { %v974_v3 = vadd.f32 %v973_v2, %v972_v1  ;;  %v1718_v1 = vmov 8.0  }
 0x6a7   :  { %1568 = vmatmul.msk.f32.vlgmr.msra.gmra.mxu3 %vm896_vm12, %v974_v3 }
 0x6a8   :  { %1276 = vmatpush.msra.mxu3 %v1217_v0 }
 0x72a   :  { %v995_v4 = vpop.f32.mrf.mxu3 }
 0x72b   :  { %v998_v5 = vmul.f32 %v995_v4, %v936_v50 }
 0x72d   :  { %v999_v6 = vadd.f32 1e-05, %v998_v5 }
 0x72f   :  { %1645 = vrsqrt.f32 %v999_v6  ;;  %vm1006_vm1 = vweird.f32 %v999_v6 }
 0x730   :  { %1647 = vrcp.f32 %v1718_v1 }
 0x735   :  { %v1646_v7 = vpop.eup %1645 }
 0x736   :  { %v1001_v8 = vmul.f32 %v1646_v7, %v999_v6  ;;  %vm1007_vm15 = vweird.f32 %v1646_v7  ;;  %v1648_v2 = vpop.eup %1647 }
 0x737   :  { %vm1008_vm2 = vmor %vm1006_vm1, %vm1007_vm15  ;;  %v1251_v3 = vmul.f32 8.0, %v1648_v2  ;;  %vm1255_vm7 = vweird.f32 %v1648_v2 }
 0x738   :  { %v1002_v9 = vmul.f32 %v1646_v7, %v1001_v8 }
 0x739   :  { %v1252_v4 = vsub.f32 1.0, %v1251_v3 }
 0x73a   :  { %v1003_v10 = vmul.f32 0.5, %v1002_v9 }
 0x73b   :  { %v1253_v5 = vmul.f32 %v1648_v2, %v1252_v4 }
 0x73c   :  { %v1004_v11 = vsub.f32 1.5, %v1003_v10 }
 0x73d   :  { %v1254_v6 = vadd.f32 %v1648_v2, %v1253_v5 }
 0x73e   :  { %v1005_v13 = vmul.f32 %v1646_v7, %v1004_v11 }
 0x740   :  { %v1009_v14 = vsel %vm1008_vm2, %v1646_v7, %v1005_v13  ;;  %v1256_v7 = vsel %vm1255_vm7, %v1648_v2, %v1254_v6 }
 0x741   :  { %v1010_v15 = vmul.f32 %v1009_v14, %v887_v12 }
 0x743   :  { %1569 = vmatmul.msk.f32.vlgmr.msrb.gmra.mxu0 %vm534_vm6, %v1010_v15 }
 0x7c0   :  { %v1031_v22 = vpop.f32.mrf.mxu0 }
 0x7c1   :  { %v1034_v23 = vperm.slane %v1031_v22, 0 }
 0x7c3   :  { %v1035_v25 = vmul.f32 %v1034_v23, %v962_v55  ;;  %v1036_v26 = vmul.f32 %v1034_v23, %v963_v56 }
 0x7c5   :  { %v1041_v27 = vadd.f32 %v1635_v24, %v1036_v26  ;;  %v1040_v28 = vadd.f32 %v1635_v24, %v1035_v25 }
 0x7c7   :  { %1570 = vmatpush.msk.msrb.mxu2 %vm250_vm0, %v1041_v27  ;;  %1573 = vmatpush.msk.msra.mxu0 %vm250_vm0, %v1041_v27 }
 0x7c9   :  { %1086 = vmatpush.msrb.mxu2 %v1040_v28  ;;  %1136 = vmatpush.msra.mxu0 %v1040_v28 }
 0x7ca   :  { %1571 = vmatmul.msk.f32.vlgmr.msrb.gmra.mxu2 %vm1064_vm3, %v1042_v29  ;;  %1574 = vmatmul.msk.f32.vlgmr.msra.gmra.mxu0 %vm1064_vm3, %v1043_v30  ;;  %v1213_v29 = vld [vmem:[%s2196_s28] sm:$0x1] }
 0x7cb   :  { %1576 = vmatpush.msk.msra.mxu2 %vm250_vm0, %v1041_v27  ;;  %1201 = vmatpush.msrb.mxu0 %v1062_v34  ;;  %v1357_v34 = vld [vmem:[%s2197_s1] sm:$0xff] }
 0x7cd   :  { %1183 = vmatpush.msra.mxu2 %v1040_v28  ;;  %1202 = vmatpush.msrb.mxu0 %v1061_v36 }
 0x7cf   :  { %1203 = vmatpush.msrb.mxu0 %v1060_v38  ;;  %1244 = vmatpush.msrb.mxu2 %v1216_v47  ;;  %v1637_v38 = vld [vmem:[%s2198_s2] ss:$0 sm:$0xff] }
 0x7d0   :  { %v1638_v47 = vld [vmem:[%s1918_s12] ss:$0 sm:$0xff] }
 0x7d1   :  { %1204 = vmatpush.msrb.mxu0 %v1059_v40  ;;  %1245 = vmatpush.msrb.mxu2 %v1215_v48 }
 0x7d2   :  { %1577 = vmatmul.msk.f32.vlgmr.msra.gmra.mxu2 %vm1064_vm3, %v1044_v31 }
 0x7d3   :  { %1205 = vmatpush.msrb.mxu0 %v1058_v42  ;;  %1345 = vmatpush.msra.mxu2 %v1217_v0  ;;  %v1386_v42 = vld [vmem:[%s1908_s27] sm:$0x3]  ;;  %s1719_s27 = smov [#allocation2]  }
 0x7d4   :  { %s1470_s10 = sshll.u32 %s1719_s27, 4  ;;  %s1471_s10 = int_to_ptr.vmem [resolvable:$true] %s1470_s10 }
 0x7d5   :  { %1206 = vmatpush.msrb.mxu0 %v1057_v43  ;;  %v1387_v43 = vld [vmem:[%s1913_s4] sm:$0xff]  ;;  %s1663_s4 = sshra.s32 %s1473_s11, 4  ;;  %s1664_s4 = int_to_ptr.hbm [resolvable:$true] %s1663_s4 }
 0x7d6   :  { %s1665_s15 = scalar_lea.hbm %s1664_s4, 2  ;;  %p1668_p1 = scmp.lt.s32.totalorder %s1664_s4, %s1923_s6 }
 0x7d7   :  { %1429 = vmatpush.msra.mxu0 %v1388_v35  ;;  %p1666_p0 = scmp.ne.s32.totalorder %s1664_s4, %s1665_s15  ;;  %p1669_p2 = scmp.lt.s32.totalorder %s1667_s16, %s1665_s15 }
 0x7d9   :  { %1430 = vmatpush.msra.mxu0 %v1387_v43  ;;  %p1670_p3 = por %p1669_p2, %p1668_p1 }
 0x7db   :  { %p1671_p4 = pnand %p1670_p3, %p1666_p0 }
 0x847   :  { %v1138_v44 = vpop.f32.mrf.mxu0 }
 0x848   :  { %1575 = vmatmul.msk.f32.vlgmr.msra.gmra.mxu1 %vm896_vm12, %v1138_v44 }
 0x84d   :  { %v1088_v45 = vpop.f32.mrf.mxu2 }
 0x84e   :  { %1572 = vmatmul.msk.f32.vlgmr.msrb.gmra.mxu3 %vm896_vm12, %v1088_v45 }
 0x855   :  { %v1185_v46 = vpop.f32.mrf.mxu2 }
 0x856   :  { %1578 = vmatmul.msk.f32.vlgmr.msrb.gmra.mxu0 %vm896_vm12, %v1185_v46 }
 0x8c5   :  { %v1161_v51 = vpop.f32.mrf.mxu1 }
 0x8d1   :  { %v1111_v50 = vpop.f32.mrf.mxu3 }
 0x8d2   :  { %v1117_v52 = vadd.f32 %v1636_v49, %v1111_v50 }
 0x8d3   :  { %v1208_v53 = vpop.f32.mrf.mxu0 }
 0x8d4   :  { %v1164_v54 = vadd.f32 %v1161_v51, %v1117_v52 }
 0x8d6   :  { %v1211_v55 = vadd.f32 %v1208_v53, %v1164_v54 }
 0x8d8   :  { %v1212_v56 = vmax.f32 %v1211_v55, 0.0 }
 0x8da   :  { %v1219_v57 = vsel %vm1218_vm4, %v1212_v56, 0.0 }
 0x8db   :  { %v1220_v58 = vrot.slane %v1219_v57, 4 }
 0x8dd   :  { %v1221_v59 = vadd.f32 %v1220_v58, %v1219_v57 }
 0x8df   :  { %v1222_v60 = vrot.slane %v1221_v59, 2 }
 0x8e1   :  { %v1223_v61 = vadd.f32 %v1222_v60, %v1221_v59 }
 0x8e3   :  { %v1224_v62 = vrot.slane %v1223_v61, 1 }
 0x8e5   :  { %v1225_v63 = vadd.f32 %v1224_v62, %v1223_v61 }
 0x8e7   :  { %1579 = vmatmul.msk.f32.vlgmr.msrb.gmra.mxu2 %vm1226_vm5, %v1225_v63 }
 0x8e8   :  { %1452 = vmatpush.msrb.mxu2 %v1358_v33 }
 0x8ea   :  { %1453 = vmatpush.msrb.mxu2 %v1357_v34 }
 0x96a   :  { %v1247_v8 = vpop.f32.mrf.mxu2 }
 0x96b   :  { %v1257_v9 = vmul.f32 %v1256_v7, %v1247_v8 }
 0x96d   :  { %1580 = vmatmul.msk.f32.vlgmr.msra.gmra.mxu3 %vm534_vm6, %v1257_v9 }
 0x9f0   :  { %v1278_v10 = vpop.f32.mrf.mxu3 }
 0x9f1   :  { %v1281_v11 = vperm.slane %v1278_v10, 0 }
 0x9f3   :  { %v1282_v12 = vsub.f32 %v1212_v56, %v1281_v11 }
 0x9f5   :  { %v1283_v13 = vmul.f32 %v1282_v12, %v1282_v12 }
 0x9f7   :  { %v1284_v14 = vsel %vm1218_vm4, %v1283_v13, 0.0 }
 0x9f8   :  { %v1285_v15 = vrot.slane %v1284_v14, 4 }
 0x9fa   :  { %v1286_v16 = vadd.f32 %v1285_v15, %v1284_v14 }
 0x9fc   :  { %v1287_v17 = vrot.slane %v1286_v16, 2 }
 0x9fe   :  { %v1288_v18 = vadd.f32 %v1287_v17, %v1286_v16 }
 0xa00   :  { %v1289_v19 = vrot.slane %v1288_v18, 1 }
 0xa02   :  { %v1290_v20 = vadd.f32 %v1289_v19, %v1288_v18 }
 0xa04   :  { %1581 = vmatmul.msk.f32.vlgmr.msrb.gmra.mxu1 %vm1226_vm5, %v1290_v20 }
 0xa81   :  { %v1311_v21 = vpop.f32.mrf.mxu1 }
 0xa82   :  { %v1314_v22 = vmul.f32 %v1311_v21, %v1256_v7 }
 0xa84   :  { %v1315_v23 = vadd.f32 1e-05, %v1314_v22 }
 0xa86   :  { %1649 = vrsqrt.f32 %v1315_v23  ;;  %vm1322_vm9 = vweird.f32 %v1315_v23 }
 0xa8c   :  { %v1650_v24 = vpop.eup %1649 }
 0xa8d   :  { %v1317_v25 = vmul.f32 %v1650_v24, %v1315_v23  ;;  %vm1323_vm8 = vweird.f32 %v1650_v24 }
 0xa8e   :  { %vm1324_vm10 = vmor %vm1322_vm9, %vm1323_vm8 }
 0xa8f   :  { %v1318_v26 = vmul.f32 %v1650_v24, %v1317_v25 }
 0xa91   :  { %v1319_v27 = vmul.f32 0.5, %v1318_v26 }
 0xa93   :  { %v1320_v28 = vsub.f32 1.5, %v1319_v27 }
 0xa95   :  { %v1321_v30 = vmul.f32 %v1650_v24, %v1320_v28 }
 0xa97   :  { %v1325_v31 = vsel %vm1324_vm10, %v1650_v24, %v1321_v30 }
 0xa98   :  { %v1326_v32 = vmul.f32 %v1325_v31, %v1213_v29 }
 0xa9a   :  { %1582 = vmatmul.msk.f32.vlgmr.msra.gmra.mxu2 %vm534_vm6, %v1326_v32 }
 0xb1d   :  { %v1347_v36 = vpop.f32.mrf.mxu2 }
 0xb1e   :  { %v1350_v37 = vperm.slane %v1347_v36, 0 }
 0xb20   :  { %v1351_v39 = vmul.f32 %v1350_v37, %v1282_v12 }
 0xb22   :  { %v1355_v40 = vadd.f32 %v1637_v38, %v1351_v39 }
 0xb24   :  { %1583 = vmatpush.msk.msrb.mxu3 %vm250_vm0, %v1355_v40  ;;  %1585 = vmatpush.msk.msra.mxu1 %vm250_vm0, %v1355_v40  ;;  %vm1463_vm0 = vcmask 33792  }
 0xb25   :  { %1584 = vmatmul.msk.f32.vlgmr.msrb.gmra.mxu3 %vm1359_vm11, %v1356_v41  ;;  %1586 = vmatmul.msk.f32.vlgmr.msra.gmra.mxu1 %vm1359_vm11, %v1386_v42 }
 0xba2   :  { %v1409_v44 = vpop.f32.mrf.mxu1 }
 0xba3   :  { %1587 = vmatmul.msk.f32.vlgmr.msra.gmra.mxu0 %vm1226_vm5, %v1409_v44 }
 0xba8   :  { %v1383_v45 = vpop.f32.mrf.mxu3 }
 0xba9   :  { %1588 = vmatmul.msk.f32.vlgmr.msrb.gmra.mxu2 %vm1226_vm5, %v1383_v45 }
 0xc20   :  { %v1432_v46 = vpop.f32.mrf.mxu0 }
 0xc2c   :  { %v1455_v48 = vpop.f32.mrf.mxu2 }
 0xc2d   :  { %v1456_v49 = vadd.f32 %v1455_v48, %v1432_v46 }
 0xc2f   :  { %v1462_v50 = vadd.f32 %v1638_v47, %v1456_v49 }
 0xc31   :  { %1464 = vst.msk [vmem:[#allocation2] sm:$0x3] %vm1463_vm0, %v1462_v50 }
 0xc32   :  { %1674 = shalt.err (!%p1671_p4)
}
 0xc33   :  { %1475 = dma.vmem_to_hbm [thread:$0]  %s1471_s10, 32, %s1473_s11, [#allocation3]  }
 0xc34   :  { %1675 = dma.done.wait [#allocation3], 32  }
 0xc35   :  { %1676 = vsyncadd [#allocation3], 4294967264 }
 0xc36   :  { %1480 = vsyncpa [#allocation3], 1 }

</bundles_post_ra>
